<compile_context>
chip_gen: v7x
topology: tpu7x:2x2x1
jax: 0.10.0
libtpu: 0.0.40
codegen_flags: <defaults>
</compile_context>

<pallas_src>
import jax
import jax.numpy as jnp
import numpy as np
from jax import lax
from jax.experimental import pallas as pl
from jax.experimental.pallas import tpu as pltpu

HIDDEN = 128           # hidden_dim
TIME_EMB = 128         # time_emb_dim
NUM_LAYERS = 3         # num ResBlocks
CONCAT = 3 * TIME_EMB  # 2*time_emb + time_emb = 384
OUT_DIM = 2            # input_dim for twoD_data=True
OUT_ROWS = 8           # sublane-padded output channels (rows 2..7 unused)
LN_EPS = 1e-5

# packed f32 "vecs" rows (all [*,128])
ROW_FREQ_T = 0         # base freqs duplicated [f, f]        (scale=1.0, for t)
ROW_FREQ_XY = 1        # 25.0 * base freqs duplicated        (scale=25.0, for x/y)
ROW_PHASE = 2          # [0...0, pi/2...pi/2]  (cos(a) = sin(a + pi/2) trick)
ROW_B_IN = 3
ROW_LNW = 4            # 3 rows
ROW_LNB = 7            # 3 rows
ROW_RB_B = 10          # 3 rows
ROW_LNF_W = 13
ROW_LNF_B = 14
# row 15: zero pad (keeps the next slices f32-tile aligned)
ROW_W_OUT_T = 16       # 8 rows: transposed output projection, rows >= OUT_DIM zero
ROW_B_OUT_C = 24       # 8 rows: b_out[o] broadcast over all 128 lanes (col 0 used)
VEC_ROWS = 32


def _gelu(x):
    # exact (erf-based) GELU, matching torch.nn.GELU() default
    return 0.5 * x * (1.0 + lax.erf(x * (1.0 / jnp.sqrt(2.0).astype(x.dtype))))


def _layernorm(x, w, b, eps=LN_EPS):
    mu = jnp.mean(x, axis=-1, keepdims=True)
    var = jnp.mean(jnp.square(x - mu), axis=-1, keepdims=True)
    return (x - mu) * lax.rsqrt(var + eps) * w + b


def toy_kernel(xt_ref, vec_ref, w_in_ref, w_hid_ref, o_ref):
    vec = vec_ref[...]                                        # [32,128] f32
    freq_t = vec[ROW_FREQ_T:ROW_FREQ_T + 1, :]
    freq_xy = vec[ROW_FREQ_XY:ROW_FREQ_XY + 1, :]
    phase = vec[ROW_PHASE:ROW_PHASE + 1, :]
    b_in = vec[ROW_B_IN:ROW_B_IN + 1, :]
    lnf_w = vec[ROW_LNF_W:ROW_LNF_W + 1, :]
    lnf_b = vec[ROW_LNF_B:ROW_LNF_B + 1, :]
    w_out_t = vec[ROW_W_OUT_T:ROW_W_OUT_T + OUT_ROWS, :].astype(jnp.bfloat16)  # [8,128]
    b_out_c = vec[ROW_B_OUT_C:ROW_B_OUT_C + OUT_ROWS, 0:1]    # [8,1]

    xt = xt_ref[...]                                          # [TB, 8] f32
    x0 = xt[:, 0:1]
    x1 = xt[:, 1:2]
    tt = xt[:, 2:3]

    # sinusoidal embeddings, phase trick: lanes [0,64)=sin, [64,128)=cos  (f32 math)
    x_emb = jnp.sin(x0 * freq_xy + phase)
    y_emb = jnp.sin(x1 * freq_xy + phase)
    t_emb = jnp.sin(tt * freq_t + phase)

    # fused K=384 input projection on the MXU (bf16 operands, f32 accumulate)
    emb = jnp.concatenate([x_emb.astype(jnp.bfloat16),
                           y_emb.astype(jnp.bfloat16),
                           t_emb.astype(jnp.bfloat16)], axis=-1)   # [TB,384] bf16
    h = jnp.dot(emb, w_in_ref[...], preferred_element_type=jnp.float32)
    h = _gelu(h + b_in)                                       # [TB,128] f32

    # 3 ResBlocks: x + GELU(Linear(LayerNorm(x)))  (statically unrolled)
    for l in range(NUM_LAYERS):
        lnw = vec[ROW_LNW + l:ROW_LNW + l + 1, :]
        lnb = vec[ROW_LNB + l:ROW_LNB + l + 1, :]
        bb = vec[ROW_RB_B + l:ROW_RB_B + l + 1, :]
        hn = _layernorm(h, lnw, lnb).astype(jnp.bfloat16)
        h = h + _gelu(jnp.dot(hn, w_hid_ref[l],
                              preferred_element_type=jnp.float32) + bb)

    # final LayerNorm + transposed, lane-dense [8, TB] output projection
    hn = _layernorm(h, lnf_w, lnf_b).astype(jnp.bfloat16)     # [TB,128] bf16
    out_t = lax.dot_general(w_out_t, hn,
                            dimension_numbers=(((1,), (1,)), ((), ())),
                            preferred_element_type=jnp.float32)    # [8, TB]
    o_ref[...] = (out_t + b_out_c).astype(o_ref.dtype)


def _round_up(n, m):
    return ((n + m - 1) // m) * m


def _choose_tiles(B, max_tile=1024):
    """Return (TB, B_pad); grid = B_pad // TB."""
    if B <= 128:
        TB = _round_up(max(B, 8), 8)            # single tile, f32 sublane multiple
        return TB, TB
    n_tiles = max(2, -(-B // max_tile))         # >=2 tiles so v7x can use both TCs
    TB = _round_up(-(-B // n_tiles), 128)       # lane-dense transposed-output block
    return TB, n_tiles * TB


def toy_model_pallas(x, t, params, max_tile=1024):
    """x: [B,2] f32, t: [B,1] f32 -> [B,2] f32."""
    B = x.shape[0]
    TB, B_pad = _choose_tiles(B, max_tile)

    # merge x and t into one [B_pad, 8] block (cols 0,1 = x, col 2 = t, rest zero)
    xt = jnp.zeros((B_pad, 8), jnp.float32)
    xt = xt.at[:B, 0:2].set(x.astype(jnp.float32))
    xt = xt.at[:B, 2:3].set(t.astype(jnp.float32))

    out_t = pl.pallas_call(
        toy_kernel,
        out_shape=jax.ShapeDtypeStruct((OUT_ROWS, B_pad), jnp.float32),
        grid_spec=pltpu.PrefetchScalarGridSpec(
            num_scalar_prefetch=0,
            grid=(B_pad // TB,),
            in_specs=[
                pl.BlockSpec((TB, 8), lambda i: (i, 0)),                  # merged x/t
                pl.BlockSpec((VEC_ROWS, HIDDEN), lambda i: (0, 0)),       # packed vecs
                pl.BlockSpec((CONCAT, HIDDEN), lambda i: (0, 0)),         # w_in  (bf16)
                pl.BlockSpec((NUM_LAYERS, HIDDEN, HIDDEN),
                             lambda i: (0, 0, 0)),                        # rb_w  (bf16)
            ],
            out_specs=pl.BlockSpec((OUT_ROWS, TB), lambda i: (0, i)),
        ),
        compiler_params=pltpu.CompilerParams(
            dimension_semantics=("parallel",),
        ),
    )(xt, params["vecs"], params["w_in_bf16"], params["w_hid_bf16"])
    return out_t[:OUT_DIM, :B].T


def toy_model_reference(x, t, params, mxu_bf16=False):
    """Pure-JAX reference (mirrors the PyTorch forward).  mxu_bf16=True mirrors the
    kernel's bf16 matmul-operand precision (f32 accumulation) for tight checks."""
    freq = params["freq_half"]                   # [1, 64]

    def mm(a, w):
        if mxu_bf16:
            a, w = a.astype(jnp.bfloat16), w.astype(jnp.bfloat16)
        return jnp.dot(a, w, preferred_element_type=jnp.float32)

    def sin_emb(pos, scale):
        ang = (pos * scale) * freq
        return jnp.concatenate([jnp.sin(ang), jnp.cos(ang)], axis=-1)

    h = jnp.concatenate([sin_emb(x[:, 0:1], 25.0),
                         sin_emb(x[:, 1:2], 25.0),
                         sin_emb(t, 1.0)], axis=-1)
    h = _gelu(mm(h, params["w_in"]) + params["b_in"])
    for l in range(NUM_LAYERS):
        hn = _layernorm(h, params["rb_lnw"][l], params["rb_lnb"][l])
        h = h + _gelu(mm(hn, params["rb_w"][l]) + params["rb_b"][l])
    h = _layernorm(h, params["lnf_w"], params["lnf_b"])
    return mm(h, params["w_out"]) + params["b_out"]


def init_params(key):
    """Deterministic synthetic init (PyTorch Linear-style uniform bounds) + packing."""
    def lin(k, fan_in, shape):
        bound = 1.0 / np.sqrt(fan_in)
        return jax.random.uniform(k, shape, jnp.float32, -bound, bound)

    ks = jax.random.split(key, 6)
    i = TIME_EMB // 2
    freq_half = jnp.exp(-(jnp.log(10000.0) / (i - 1))
                        * jnp.arange(i, dtype=jnp.float32)).reshape(1, i)

    w_in = lin(ks[0], CONCAT, (CONCAT, HIDDEN))
    b_in = lin(ks[1], CONCAT, (1, HIDDEN))
    rb_w = lin(ks[2], HIDDEN, (NUM_LAYERS, HIDDEN, HIDDEN))
    rb_b = lin(ks[3], HIDDEN, (NUM_LAYERS, 1, HIDDEN))
    rb_lnw = jnp.ones((NUM_LAYERS, 1, HIDDEN), jnp.float32)
    rb_lnb = jnp.zeros((NUM_LAYERS, 1, HIDDEN), jnp.float32)
    lnf_w = jnp.ones((1, HIDDEN), jnp.float32)
    lnf_b = jnp.zeros((1, HIDDEN), jnp.float32)
    w_out = lin(ks[4], HIDDEN, (HIDDEN, OUT_DIM))
    b_out = lin(ks[5], HIDDEN, (1, OUT_DIM))

    # --- packed kernel-side parameters ---
    freq_full = jnp.concatenate([freq_half, freq_half], axis=-1)          # [1,128]
    freq_xy = 25.0 * freq_full                                            # scale folded in
    phase = jnp.concatenate([jnp.zeros((1, i), jnp.float32),
                             jnp.full((1, i), np.pi / 2, jnp.float32)], axis=-1)
    w_out_t = jnp.zeros((OUT_ROWS, HIDDEN), jnp.float32).at[:OUT_DIM, :].set(w_out.T)
    b_out_c = jnp.zeros((OUT_ROWS, HIDDEN), jnp.float32).at[:OUT_DIM, :].set(
        jnp.broadcast_to(b_out.T, (OUT_DIM, HIDDEN)))

    vecs = jnp.concatenate([
        freq_full, freq_xy, phase, b_in,
        rb_lnw[:, 0, :], rb_lnb[:, 0, :], rb_b[:, 0, :],
        lnf_w, lnf_b,
        jnp.zeros((1, HIDDEN), jnp.float32),     # pad row 15 (tile alignment)
        w_out_t, b_out_c,
    ], axis=0)                                   # [32, 128] f32
    assert vecs.shape == (VEC_ROWS, HIDDEN)

    return {
        # packed (kernel) params — matmul weights shipped as bf16
        "vecs": vecs,
        "w_in_bf16": w_in.astype(jnp.bfloat16),
        "w_hid_bf16": rb_w.astype(jnp.bfloat16),
        # unpacked f32 (reference) params
        "freq_half": freq_half, "w_in": w_in, "b_in": b_in,
        "rb_lnw": rb_lnw, "rb_lnb": rb_lnb, "rb_w": rb_w, "rb_b": rb_b,
        "lnf_w": lnf_w, "lnf_b": lnf_b, "w_out": w_out, "b_out": b_out,
    }


if __name__ == "__main__":
    key = jax.random.PRNGKey(0)
    kp, _, _ = jax.random.split(key, 3)
    params = init_params(kp)

    def check(B, seed):
        kx, kt = jax.random.split(jax.random.PRNGKey(seed))
        x = jax.random.normal(kx, (B, 2), jnp.float32)             # 2-D data points
        t = jax.random.uniform(kt, (B, 1), jnp.float32) * 100.0    # diffusion timesteps
        out = jax.block_until_ready(toy_model_pallas(x, t, params))
        assert out.shape == (B, OUT_DIM), out.shape
        # tight check vs a reference that mirrors the kernel's bf16 matmul precision
        ref_bf16 = jax.block_until_ready(toy_model_reference(x, t, params, mxu_bf16=True))
        np.testing.assert_allclose(np.asarray(out), np.asarray(ref_bf16),
                                   atol=1e-2, rtol=1e-2)
        # loose check vs the exact f32 / torch-semantics forward (bf16 MXU operands)
        ref_f32 = jax.block_until_ready(toy_model_reference(x, t, params, mxu_bf16=False))
        np.testing.assert_allclose(np.asarray(out), np.asarray(ref_f32),
                                   atol=5e-2, rtol=5e-2)

    check(8, 0)     # primary small-batch check
    check(37, 1)    # ragged batch (padding path, single tile)
    check(200, 2)   # multi-tile path (grid=2, TB=128) — v7x dual-TC sharding

    print("KERNEL_OK")
</pallas_src>

<mosaic_0001>
module attributes {stable_mosaic.version = 11 : i64} {
  func.func @toy_kernel(%arg0: i32, %arg1: memref<8x8xf32, #tpu.memory_space<vmem>>, %arg2: memref<32x128xf32, #tpu.memory_space<vmem>>, %arg3: memref<384x128xbf16, #tpu.memory_space<vmem>>, %arg4: memref<3x128x128xbf16, #tpu.memory_space<vmem>>, %arg5: memref<8x8xf32, #tpu.memory_space<vmem>>) attributes {dimension_semantics = [#tpu.dimension_semantics<parallel>], iteration_bounds = array<i64: 1>, scalar_prefetch = 0 : i64, scratch_operands = 0 : i64, tpu.core_type = #tpu.core_type<tc>, window_params = [{transform_indices = @transform_0, window_bounds = array<i64: 8, 8>}, {pipeline_mode = #tpu.pipeline_mode<synchronous>, transform_indices = @transform_1, window_bounds = array<i64: 32, 128>}, {pipeline_mode = #tpu.pipeline_mode<synchronous>, transform_indices = @transform_2, window_bounds = array<i64: 384, 128>}, {pipeline_mode = #tpu.pipeline_mode<synchronous>, transform_indices = @transform_3, window_bounds = array<i64: 3, 128, 128>}, {transform_indices = @transform_4, window_bounds = array<i64: 8, 8>}]} {
    %c0 = arith.constant 0 : index
    %c0_0 = arith.constant 0 : index
    %0 = vector.load %arg2[%c0, %c0_0] : memref<32x128xf32, #tpu.memory_space<vmem>>, vector<32x128xf32>
    %1 = vector.extract_strided_slice %0 {offsets = [0, 0], sizes = [1, 128], strides = [1, 1]} : vector<32x128xf32> to vector<1x128xf32>
    %2 = vector.extract_strided_slice %0 {offsets = [1, 0], sizes = [1, 128], strides = [1, 1]} : vector<32x128xf32> to vector<1x128xf32>
    %3 = vector.extract_strided_slice %0 {offsets = [2, 0], sizes = [1, 128], strides = [1, 1]} : vector<32x128xf32> to vector<1x128xf32>
    %4 = vector.extract_strided_slice %0 {offsets = [3, 0], sizes = [1, 128], strides = [1, 1]} : vector<32x128xf32> to vector<1x128xf32>
    %5 = vector.extract_strided_slice %0 {offsets = [13, 0], sizes = [1, 128], strides = [1, 1]} : vector<32x128xf32> to vector<1x128xf32>
    %6 = vector.extract_strided_slice %0 {offsets = [14, 0], sizes = [1, 128], strides = [1, 1]} : vector<32x128xf32> to vector<1x128xf32>
    %7 = vector.extract_strided_slice %0 {offsets = [16, 0], sizes = [8, 128], strides = [1, 1]} : vector<32x128xf32> to vector<8x128xf32>
    %8 = arith.truncf %7 : vector<8x128xf32> to vector<8x128xbf16>
    %9 = vector.extract_strided_slice %0 {offsets = [24, 0], sizes = [8, 1], strides = [1, 1]} : vector<32x128xf32> to vector<8x1xf32>
    %c0_1 = arith.constant 0 : index
    %c0_2 = arith.constant 0 : index
    %10 = vector.load %arg1[%c0_1, %c0_2] : memref<8x8xf32, #tpu.memory_space<vmem>>, vector<8x8xf32>
    %11 = vector.extract_strided_slice %10 {offsets = [0, 0], sizes = [8, 1], strides = [1, 1]} : vector<8x8xf32> to vector<8x1xf32>
    %12 = vector.extract_strided_slice %10 {offsets = [0, 1], sizes = [8, 1], strides = [1, 1]} : vector<8x8xf32> to vector<8x1xf32>
    %13 = vector.extract_strided_slice %10 {offsets = [0, 2], sizes = [8, 1], strides = [1, 1]} : vector<8x8xf32> to vector<8x1xf32>
    %14 = vector.broadcast %11 : vector<8x1xf32> to vector<8x128xf32>
    %15 = vector.broadcast %2 : vector<1x128xf32> to vector<8x128xf32>
    %16 = arith.mulf %14, %15 : vector<8x128xf32>
    %17 = vector.broadcast %3 : vector<1x128xf32> to vector<8x128xf32>
    %18 = arith.addf %16, %17 : vector<8x128xf32>
    %19 = math.sin %18 : vector<8x128xf32>
    %20 = vector.broadcast %12 : vector<8x1xf32> to vector<8x128xf32>
    %21 = vector.broadcast %2 : vector<1x128xf32> to vector<8x128xf32>
    %22 = arith.mulf %20, %21 : vector<8x128xf32>
    %23 = vector.broadcast %3 : vector<1x128xf32> to vector<8x128xf32>
    %24 = arith.addf %22, %23 : vector<8x128xf32>
    %25 = math.sin %24 : vector<8x128xf32>
    %26 = vector.broadcast %13 : vector<8x1xf32> to vector<8x128xf32>
    %27 = vector.broadcast %1 : vector<1x128xf32> to vector<8x128xf32>
    %28 = arith.mulf %26, %27 : vector<8x128xf32>
    %29 = vector.broadcast %3 : vector<1x128xf32> to vector<8x128xf32>
    %30 = arith.addf %28, %29 : vector<8x128xf32>
    %31 = math.sin %30 : vector<8x128xf32>
    %32 = arith.truncf %19 : vector<8x128xf32> to vector<8x128xbf16>
    %33 = arith.truncf %25 : vector<8x128xf32> to vector<8x128xbf16>
    %34 = arith.truncf %31 : vector<8x128xf32> to vector<8x128xbf16>
    %35 = tpu.concatenate %32, %33, %34 in 1 : vector<8x128xbf16>, vector<8x128xbf16>, vector<8x128xbf16> -> vector<8x384xbf16>
    %c0_3 = arith.constant 0 : index
    %c0_4 = arith.constant 0 : index
    %36 = vector.load %arg3[%c0_3, %c0_4] : memref<384x128xbf16, #tpu.memory_space<vmem>>, vector<384x128xbf16>
    %cst = arith.constant dense<0.000000e+00> : vector<8x128xf32>
    %37 = tpu.matmul %35, %36, %cst {dimension_numbers = #tpu.dot_dimension_numbers<[1], [0], [0], [1], [0, 0, 1, 1], [], []>} : vector<8x384xbf16>, vector<384x128xbf16>, vector<8x128xf32> -> vector<8x128xf32>
    %38 = vector.broadcast %4 : vector<1x128xf32> to vector<8x128xf32>
    %39 = arith.addf %37, %38 : vector<8x128xf32>
    %cst_5 = arith.constant 5.000000e-01 : f32
    %40 = vector.broadcast %cst_5 : f32 to vector<8x128xf32>
    %41 = arith.mulf %40, %39 : vector<8x128xf32>
    %cst_6 = arith.constant 2.000000e+00 : f32
    %42 = math.sqrt %cst_6 : f32
    %cst_7 = arith.constant 1.000000e+00 : f32
    %43 = arith.divf %cst_7, %42 : f32
    %44 = vector.broadcast %43 : f32 to vector<8x128xf32>
    %45 = arith.mulf %39, %44 : vector<8x128xf32>
    %46 = math.erf %45 : vector<8x128xf32>
    %cst_8 = arith.constant 1.000000e+00 : f32
    %47 = vector.broadcast %cst_8 : f32 to vector<8x128xf32>
    %48 = arith.addf %47, %46 : vector<8x128xf32>
    %49 = arith.mulf %41, %48 : vector<8x128xf32>
    %50 = vector.extract_strided_slice %0 {offsets = [4, 0], sizes = [1, 128], strides = [1, 1]} : vector<32x128xf32> to vector<1x128xf32>
    %51 = vector.extract_strided_slice %0 {offsets = [7, 0], sizes = [1, 128], strides = [1, 1]} : vector<32x128xf32> to vector<1x128xf32>
    %52 = vector.extract_strided_slice %0 {offsets = [10, 0], sizes = [1, 128], strides = [1, 1]} : vector<32x128xf32> to vector<1x128xf32>
    %cst_9 = arith.constant dense<0.000000e+00> : vector<8xf32>
    %53 = vector.multi_reduction <add>, %49, %cst_9 [1] : vector<8x128xf32> to vector<8xf32>
    %54 = vector.shape_cast %53 : vector<8xf32> to vector<8x1xf32>
    %cst_10 = arith.constant 1.280000e+02 : f32
    %55 = vector.broadcast %cst_10 : f32 to vector<8x1xf32>
    %56 = arith.divf %54, %55 : vector<8x1xf32>
    %57 = vector.broadcast %56 : vector<8x1xf32> to vector<8x128xf32>
    %58 = arith.subf %49, %57 : vector<8x128xf32>
    %59 = arith.mulf %58, %58 : vector<8x128xf32>
    %cst_11 = arith.constant dense<0.000000e+00> : vector<8xf32>
    %60 = vector.multi_reduction <add>, %59, %cst_11 [1] : vector<8x128xf32> to vector<8xf32>
    %61 = vector.shape_cast %60 : vector<8xf32> to vector<8x1xf32>
    %cst_12 = arith.constant 1.280000e+02 : f32
    %62 = vector.broadcast %cst_12 : f32 to vector<8x1xf32>
    %63 = arith.divf %61, %62 : vector<8x1xf32>
    %64 = vector.broadcast %56 : vector<8x1xf32> to vector<8x128xf32>
    %65 = arith.subf %49, %64 : vector<8x128xf32>
    %cst_13 = arith.constant 9.99999974E-6 : f32
    %66 = vector.broadcast %cst_13 : f32 to vector<8x1xf32>
    %67 = arith.addf %63, %66 : vector<8x1xf32>
    %68 = math.rsqrt %67 : vector<8x1xf32>
    %69 = vector.broadcast %68 : vector<8x1xf32> to vector<8x128xf32>
    %70 = arith.mulf %65, %69 : vector<8x128xf32>
    %71 = vector.broadcast %50 : vector<1x128xf32> to vector<8x128xf32>
    %72 = arith.mulf %70, %71 : vector<8x128xf32>
    %73 = vector.broadcast %51 : vector<1x128xf32> to vector<8x128xf32>
    %74 = arith.addf %72, %73 : vector<8x128xf32>
    %75 = arith.truncf %74 : vector<8x128xf32> to vector<8x128xbf16>
    %c0_14 = arith.constant 0 : index
    %c0_15 = arith.constant 0 : index
    %c0_16 = arith.constant 0 : index
    %76 = vector.load %arg4[%c0_14, %c0_15, %c0_16] : memref<3x128x128xbf16, #tpu.memory_space<vmem>>, vector<1x128x128xbf16>
    %77 = vector.shape_cast %76 : vector<1x128x128xbf16> to vector<128x128xbf16>
    %cst_17 = arith.constant dense<0.000000e+00> : vector<8x128xf32>
    %78 = tpu.matmul %75, %77, %cst_17 {dimension_numbers = #tpu.dot_dimension_numbers<[1], [0], [0], [1], [0, 0, 1, 1], [], []>} : vector<8x128xbf16>, vector<128x128xbf16>, vector<8x128xf32> -> vector<8x128xf32>
    %79 = vector.broadcast %52 : vector<1x128xf32> to vector<8x128xf32>
    %80 = arith.addf %78, %79 : vector<8x128xf32>
    %cst_18 = arith.constant 5.000000e-01 : f32
    %81 = vector.broadcast %cst_18 : f32 to vector<8x128xf32>
    %82 = arith.mulf %81, %80 : vector<8x128xf32>
    %cst_19 = arith.constant 2.000000e+00 : f32
    %83 = math.sqrt %cst_19 : f32
    %cst_20 = arith.constant 1.000000e+00 : f32
    %84 = arith.divf %cst_20, %83 : f32
    %85 = vector.broadcast %84 : f32 to vector<8x128xf32>
    %86 = arith.mulf %80, %85 : vector<8x128xf32>
    %87 = math.erf %86 : vector<8x128xf32>
    %cst_21 = arith.constant 1.000000e+00 : f32
    %88 = vector.broadcast %cst_21 : f32 to vector<8x128xf32>
    %89 = arith.addf %88, %87 : vector<8x128xf32>
    %90 = arith.mulf %82, %89 : vector<8x128xf32>
    %91 = arith.addf %49, %90 : vector<8x128xf32>
    %92 = vector.extract_strided_slice %0 {offsets = [5, 0], sizes = [1, 128], strides = [1, 1]} : vector<32x128xf32> to vector<1x128xf32>
    %93 = vector.extract_strided_slice %0 {offsets = [8, 0], sizes = [1, 128], strides = [1, 1]} : vector<32x128xf32> to vector<1x128xf32>
    %94 = vector.extract_strided_slice %0 {offsets = [11, 0], sizes = [1, 128], strides = [1, 1]} : vector<32x128xf32> to vector<1x128xf32>
    %cst_22 = arith.constant dense<0.000000e+00> : vector<8xf32>
    %95 = vector.multi_reduction <add>, %91, %cst_22 [1] : vector<8x128xf32> to vector<8xf32>
    %96 = vector.shape_cast %95 : vector<8xf32> to vector<8x1xf32>
    %cst_23 = arith.constant 1.280000e+02 : f32
    %97 = vector.broadcast %cst_23 : f32 to vector<8x1xf32>
    %98 = arith.divf %96, %97 : vector<8x1xf32>
    %99 = vector.broadcast %98 : vector<8x1xf32> to vector<8x128xf32>
    %100 = arith.subf %91, %99 : vector<8x128xf32>
    %101 = arith.mulf %100, %100 : vector<8x128xf32>
    %cst_24 = arith.constant dense<0.000000e+00> : vector<8xf32>
    %102 = vector.multi_reduction <add>, %101, %cst_24 [1] : vector<8x128xf32> to vector<8xf32>
    %103 = vector.shape_cast %102 : vector<8xf32> to vector<8x1xf32>
    %cst_25 = arith.constant 1.280000e+02 : f32
    %104 = vector.broadcast %cst_25 : f32 to vector<8x1xf32>
    %105 = arith.divf %103, %104 : vector<8x1xf32>
    %106 = vector.broadcast %98 : vector<8x1xf32> to vector<8x128xf32>
    %107 = arith.subf %91, %106 : vector<8x128xf32>
    %cst_26 = arith.constant 9.99999974E-6 : f32
    %108 = vector.broadcast %cst_26 : f32 to vector<8x1xf32>
    %109 = arith.addf %105, %108 : vector<8x1xf32>
    %110 = math.rsqrt %109 : vector<8x1xf32>
    %111 = vector.broadcast %110 : vector<8x1xf32> to vector<8x128xf32>
    %112 = arith.mulf %107, %111 : vector<8x128xf32>
    %113 = vector.broadcast %92 : vector<1x128xf32> to vector<8x128xf32>
    %114 = arith.mulf %112, %113 : vector<8x128xf32>
    %115 = vector.broadcast %93 : vector<1x128xf32> to vector<8x128xf32>
    %116 = arith.addf %114, %115 : vector<8x128xf32>
    %117 = arith.truncf %116 : vector<8x128xf32> to vector<8x128xbf16>
    %c1 = arith.constant 1 : index
    %c0_27 = arith.constant 0 : index
    %c0_28 = arith.constant 0 : index
    %118 = vector.load %arg4[%c1, %c0_27, %c0_28] : memref<3x128x128xbf16, #tpu.memory_space<vmem>>, vector<1x128x128xbf16>
    %119 = vector.shape_cast %118 : vector<1x128x128xbf16> to vector<128x128xbf16>
    %cst_29 = arith.constant dense<0.000000e+00> : vector<8x128xf32>
    %120 = tpu.matmul %117, %119, %cst_29 {dimension_numbers = #tpu.dot_dimension_numbers<[1], [0], [0], [1], [0, 0, 1, 1], [], []>} : vector<8x128xbf16>, vector<128x128xbf16>, vector<8x128xf32> -> vector<8x128xf32>
    %121 = vector.broadcast %94 : vector<1x128xf32> to vector<8x128xf32>
    %122 = arith.addf %120, %121 : vector<8x128xf32>
    %cst_30 = arith.constant 5.000000e-01 : f32
    %123 = vector.broadcast %cst_30 : f32 to vector<8x128xf32>
    %124 = arith.mulf %123, %122 : vector<8x128xf32>
    %cst_31 = arith.constant 2.000000e+00 : f32
    %125 = math.sqrt %cst_31 : f32
    %cst_32 = arith.constant 1.000000e+00 : f32
    %126 = arith.divf %cst_32, %125 : f32
    %127 = vector.broadcast %126 : f32 to vector<8x128xf32>
    %128 = arith.mulf %122, %127 : vector<8x128xf32>
    %129 = math.erf %128 : vector<8x128xf32>
    %cst_33 = arith.constant 1.000000e+00 : f32
    %130 = vector.broadcast %cst_33 : f32 to vector<8x128xf32>
    %131 = arith.addf %130, %129 : vector<8x128xf32>
    %132 = arith.mulf %124, %131 : vector<8x128xf32>
    %133 = arith.addf %91, %132 : vector<8x128xf32>
    %134 = vector.extract_strided_slice %0 {offsets = [6, 0], sizes = [1, 128], strides = [1, 1]} : vector<32x128xf32> to vector<1x128xf32>
    %135 = vector.extract_strided_slice %0 {offsets = [9, 0], sizes = [1, 128], strides = [1, 1]} : vector<32x128xf32> to vector<1x128xf32>
    %136 = vector.extract_strided_slice %0 {offsets = [12, 0], sizes = [1, 128], strides = [1, 1]} : vector<32x128xf32> to vector<1x128xf32>
    %cst_34 = arith.constant dense<0.000000e+00> : vector<8xf32>
    %137 = vector.multi_reduction <add>, %133, %cst_34 [1] : vector<8x128xf32> to vector<8xf32>
    %138 = vector.shape_cast %137 : vector<8xf32> to vector<8x1xf32>
    %cst_35 = arith.constant 1.280000e+02 : f32
    %139 = vector.broadcast %cst_35 : f32 to vector<8x1xf32>
    %140 = arith.divf %138, %139 : vector<8x1xf32>
    %141 = vector.broadcast %140 : vector<8x1xf32> to vector<8x128xf32>
    %142 = arith.subf %133, %141 : vector<8x128xf32>
    %143 = arith.mulf %142, %142 : vector<8x128xf32>
    %cst_36 = arith.constant dense<0.000000e+00> : vector<8xf32>
    %144 = vector.multi_reduction <add>, %143, %cst_36 [1] : vector<8x128xf32> to vector<8xf32>
    %145 = vector.shape_cast %144 : vector<8xf32> to vector<8x1xf32>
    %cst_37 = arith.constant 1.280000e+02 : f32
    %146 = vector.broadcast %cst_37 : f32 to vector<8x1xf32>
    %147 = arith.divf %145, %146 : vector<8x1xf32>
    %148 = vector.broadcast %140 : vector<8x1xf32> to vector<8x128xf32>
    %149 = arith.subf %133, %148 : vector<8x128xf32>
    %cst_38 = arith.constant 9.99999974E-6 : f32
    %150 = vector.broadcast %cst_38 : f32 to vector<8x1xf32>
    %151 = arith.addf %147, %150 : vector<8x1xf32>
    %152 = math.rsqrt %151 : vector<8x1xf32>
    %153 = vector.broadcast %152 : vector<8x1xf32> to vector<8x128xf32>
    %154 = arith.mulf %149, %153 : vector<8x128xf32>
    %155 = vector.broadcast %134 : vector<1x128xf32> to vector<8x128xf32>
    %156 = arith.mulf %154, %155 : vector<8x128xf32>
    %157 = vector.broadcast %135 : vector<1x128xf32> to vector<8x128xf32>
    %158 = arith.addf %156, %157 : vector<8x128xf32>
    %159 = arith.truncf %158 : vector<8x128xf32> to vector<8x128xbf16>
    %c2 = arith.constant 2 : index
    %c0_39 = arith.constant 0 : index
    %c0_40 = arith.constant 0 : index
    %160 = vector.load %arg4[%c2, %c0_39, %c0_40] : memref<3x128x128xbf16, #tpu.memory_space<vmem>>, vector<1x128x128xbf16>
    %161 = vector.shape_cast %160 : vector<1x128x128xbf16> to vector<128x128xbf16>
    %cst_41 = arith.constant dense<0.000000e+00> : vector<8x128xf32>
    %162 = tpu.matmul %159, %161, %cst_41 {dimension_numbers = #tpu.dot_dimension_numbers<[1], [0], [0], [1], [0, 0, 1, 1], [], []>} : vector<8x128xbf16>, vector<128x128xbf16>, vector<8x128xf32> -> vector<8x128xf32>
    %163 = vector.broadcast %136 : vector<1x128xf32> to vector<8x128xf32>
    %164 = arith.addf %162, %163 : vector<8x128xf32>
    %cst_42 = arith.constant 5.000000e-01 : f32
    %165 = vector.broadcast %cst_42 : f32 to vector<8x128xf32>
    %166 = arith.mulf %165, %164 : vector<8x128xf32>
    %cst_43 = arith.constant 2.000000e+00 : f32
    %167 = math.sqrt %cst_43 : f32
    %cst_44 = arith.constant 1.000000e+00 : f32
    %168 = arith.divf %cst_44, %167 : f32
    %169 = vector.broadcast %168 : f32 to vector<8x128xf32>
    %170 = arith.mulf %164, %169 : vector<8x128xf32>
    %171 = math.erf %170 : vector<8x128xf32>
    %cst_45 = arith.constant 1.000000e+00 : f32
    %172 = vector.broadcast %cst_45 : f32 to vector<8x128xf32>
    %173 = arith.addf %172, %171 : vector<8x128xf32>
    %174 = arith.mulf %166, %173 : vector<8x128xf32>
    %175 = arith.addf %133, %174 : vector<8x128xf32>
    %cst_46 = arith.constant dense<0.000000e+00> : vector<8xf32>
    %176 = vector.multi_reduction <add>, %175, %cst_46 [1] : vector<8x128xf32> to vector<8xf32>
    %177 = vector.shape_cast %176 : vector<8xf32> to vector<8x1xf32>
    %cst_47 = arith.constant 1.280000e+02 : f32
    %178 = vector.broadcast %cst_47 : f32 to vector<8x1xf32>
    %179 = arith.divf %177, %178 : vector<8x1xf32>
    %180 = vector.broadcast %179 : vector<8x1xf32> to vector<8x128xf32>
    %181 = arith.subf %175, %180 : vector<8x128xf32>
    %182 = arith.mulf %181, %181 : vector<8x128xf32>
    %cst_48 = arith.constant dense<0.000000e+00> : vector<8xf32>
    %183 = vector.multi_reduction <add>, %182, %cst_48 [1] : vector<8x128xf32> to vector<8xf32>
    %184 = vector.shape_cast %183 : vector<8xf32> to vector<8x1xf32>
    %cst_49 = arith.constant 1.280000e+02 : f32
    %185 = vector.broadcast %cst_49 : f32 to vector<8x1xf32>
    %186 = arith.divf %184, %185 : vector<8x1xf32>
    %187 = vector.broadcast %179 : vector<8x1xf32> to vector<8x128xf32>
    %188 = arith.subf %175, %187 : vector<8x128xf32>
    %cst_50 = arith.constant 9.99999974E-6 : f32
    %189 = vector.broadcast %cst_50 : f32 to vector<8x1xf32>
    %190 = arith.addf %186, %189 : vector<8x1xf32>
    %191 = math.rsqrt %190 : vector<8x1xf32>
    %192 = vector.broadcast %191 : vector<8x1xf32> to vector<8x128xf32>
    %193 = arith.mulf %188, %192 : vector<8x128xf32>
    %194 = vector.broadcast %5 : vector<1x128xf32> to vector<8x128xf32>
    %195 = arith.mulf %193, %194 : vector<8x128xf32>
    %196 = vector.broadcast %6 : vector<1x128xf32> to vector<8x128xf32>
    %197 = arith.addf %195, %196 : vector<8x128xf32>
    %198 = arith.truncf %197 : vector<8x128xf32> to vector<8x128xbf16>
    %cst_51 = arith.constant dense<0.000000e+00> : vector<8x8xf32>
    %199 = tpu.matmul %8, %198, %cst_51 {dimension_numbers = #tpu.dot_dimension_numbers<[1], [1], [0], [0], [0, 0, 1, 0], [], []>} : vector<8x128xbf16>, vector<8x128xbf16>, vector<8x8xf32> -> vector<8x8xf32>
    %200 = vector.broadcast %9 : vector<8x1xf32> to vector<8x8xf32>
    %201 = arith.addf %199, %200 : vector<8x8xf32>
    %c0_52 = arith.constant 0 : index
    %c0_53 = arith.constant 0 : index
    %202 = vector.load %arg5[%c0_52, %c0_53] : memref<8x8xf32, #tpu.memory_space<vmem>>, vector<8x8xf32>
    tpu.vector_store %arg5[%c0_52, %c0_53], %201 {strides = array<i32>} : memref<8x8xf32, #tpu.memory_space<vmem>>, vector<8x8xf32>,
    return
  }
  func.func @transform_0(%arg0: i32) -> (i32, i32) {
    %c0_i32 = arith.constant 0 : i32
    %c0_i32_0 = arith.constant 0 : i32
    return %arg0, %c0_i32 : i32, i32
  }
  func.func @transform_1(%arg0: i32) -> (i32, i32) {
    %c0_i32 = arith.constant 0 : i32
    %c0_i32_0 = arith.constant 0 : i32
    %c0_i32_1 = arith.constant 0 : i32
    return %c0_i32, %c0_i32_0 : i32, i32
  }
  func.func @transform_2(%arg0: i32) -> (i32, i32) {
    %c0_i32 = arith.constant 0 : i32
    %c0_i32_0 = arith.constant 0 : i32
    %c0_i32_1 = arith.constant 0 : i32
    return %c0_i32, %c0_i32_0 : i32, i32
  }
  func.func @transform_3(%arg0: i32) -> (i32, i32, i32) {
    %c0_i32 = arith.constant 0 : i32
    %c0_i32_0 = arith.constant 0 : i32
    %c0_i32_1 = arith.constant 0 : i32
    %c0_i32_2 = arith.constant 0 : i32
    return %c0_i32, %c0_i32_0, %c0_i32_1 : i32, i32, i32
  }
  func.func @transform_4(%arg0: i32) -> (i32, i32) {
    %c0_i32 = arith.constant 0 : i32
    %c0_i32_0 = arith.constant 0 : i32
    return %c0_i32, %arg0 : i32, i32
  }
}

</mosaic_0001>

<bundles_post_ra>
// kernel: tpu_custom_call.1
= control target key start
LH: loop header
LB: loop body
LE: loop exit
PB: predicated region body
PF: predicated region fallthrough
CT: control target
= control target key end

     0   :  { %9 = vsyncpa [#allocation3], 0  ;;  %s2020_s0 = inlined_call_operand.hbm [shape: f32[8,8], index: 0, kind: input, shape index: {}]   ;;  %s2021_s1 = inlined_call_operand.hbm [shape: f32[32,128], index: 1, kind: input, shape index: {}]   ;;  %s2022_s2 = inlined_call_operand.hbm [shape: bf16[384,128], index: 2, kind: input, shape index: {}]   ;;  %s2023_s3 = inlined_call_operand.hbm [shape: bf16[3,128,128], index: 3, kind: input, shape index: {}]   ;;  %s2024_s4 = inlined_call_operand.hbm [shape: f32[8,8], index: 4, kind: output, shape index: {}]  }
   0x1   :  { %10 = vsyncpa [#allocation6], 0 }
   0x2   :  { %11 = vsyncpa [#allocation9], 0 }
   0x3   :  { %12 = vsyncpa [#allocation4], 0  ;;  %s1638_s15 = smov [#allocation5]   ;;  %s1520_s19 = scalar_lea.hbm %s2021_s1, 512 }
   0x4   :  { %s28_s16 = sshll.u32 %s1638_s15, 4  ;;  %p1521_p0 = scmp.ne.s32.totalorder %s2021_s1, %s1520_s19  ;;  %s29_s16 = int_to_ptr.vmem [resolvable:$true] %s28_s16 }
   0x5   :  { %p1524_p1 = scmp.lt.u32.totalorder %s1520_s19, %s2021_s1 }
   0x7   :  { %p1526_p2 = pnand %p1524_p1, %p1521_p0 }
   0x9   :  { %1529 = shalt.err (!%p1526_p2)
}
   0xa   :  { %s1530_s24 = scalar_lea.vmem %s29_s16, 512  ;;  %p1535_p4 = scmp.lt.s32.totalorder %s29_s16, %s29_s16 }
   0xb   :  { %p1531_p3 = scmp.ne.s32.totalorder %s29_s16, %s1530_s24  ;;  %p1536_p5 = scmp.lt.s32.totalorder %s1530_s24, %s1530_s24 }
   0xd   :  { %p1537_p6 = por %p1536_p5, %p1535_p4 }
   0xf   :  { %p1538_p7 = pnand %p1537_p6, %p1531_p3 }
  0x11   :  { %1541 = shalt.err (!%p1538_p7)
}
  0x12   :  { %s1639_s25 = smov 128   ;;  %s1640_s26 = smov 8  }
  0x13   :  { %34 = dma.hbm_to_vmem [thread:$0]  %s2021_s1, 512, %s29_s16, [#allocation6], %s1639_s25, %s1639_s25, %s1640_s26  }
  0x14   :  { %s1641_s29 = smov [#allocation2]   ;;  %s1642_s5 = smov [#allocation7]  }
  0x15   :  { %s19_s30 = sshll.u32 %s1641_s29, 4  ;;  %s40_s6 = sshll.u32 %s1642_s5, 4  ;;  %s20_s30 = int_to_ptr.vmem [resolvable:$true] %s19_s30  ;;  %s41_s6 = int_to_ptr.vmem [resolvable:$true] %s40_s6 }
  0x16   :  { %s1542_s9 = scalar_lea.hbm %s2020_s0, 128 }
  0x17   :  { %p1543_p8 = scmp.ne.s32.totalorder %s2020_s0, %s1542_s9  ;;  %p1546_p9 = scmp.lt.u32.totalorder %s1542_s9, %s2020_s0 }
  0x19   :  { %p1548_p10 = pnand %p1546_p9, %p1543_p8 }
  0x1b   :  { %1551 = shalt.err (!%p1548_p10)
}
  0x1c   :  { %s1552_s1 = scalar_lea.vmem %s20_s30, 128  ;;  %p1557_p12 = scmp.lt.s32.totalorder %s20_s30, %s20_s30 }
  0x1d   :  { %p1553_p11 = scmp.ne.s32.totalorder %s20_s30, %s1552_s1  ;;  %p1558_p13 = scmp.lt.s32.totalorder %s1552_s1, %s1552_s1 }
  0x1f   :  { %p1559_p0 = por %p1558_p13, %p1557_p12 }
  0x21   :  { %p1560_p1 = pnand %p1559_p0, %p1553_p11 }
  0x23   :  { %1563 = shalt.err (!%p1560_p1)
}
  0x24   :  { %22 = dma.hbm_to_vmem [thread:$0]  %s2020_s0, 128, %s20_s30, [#allocation3]  }
  0x25   :  { %s1564_s18 = scalar_lea.hbm %s2022_s2, 3072 }
  0x26   :  { %p1565_p2 = scmp.ne.s32.totalorder %s2022_s2, %s1564_s18  ;;  %p1568_p3 = scmp.lt.u32.totalorder %s1564_s18, %s2022_s2 }
  0x28   :  { %p1570_p4 = pnand %p1568_p3, %p1565_p2 }
  0x2a   :  { %1573 = shalt.err (!%p1570_p4)
}
  0x2b   :  { %s1574_s23 = scalar_lea.vmem %s41_s6, 3072  ;;  %p1579_p6 = scmp.lt.s32.totalorder %s41_s6, %s41_s6 }
  0x2c   :  { %p1575_p5 = scmp.ne.s32.totalorder %s41_s6, %s1574_s23  ;;  %p1580_p7 = scmp.lt.s32.totalorder %s1574_s23, %s1574_s23 }
  0x2e   :  { %p1581_p8 = por %p1580_p7, %p1579_p6 }
  0x30   :  { %p1582_p9 = pnand %p1581_p8, %p1575_p5 }
  0x32   :  { %1585 = shalt.err (!%p1582_p9)
}
  0x33   :  { %s1643_s0 = smov 64   ;;  %s1644_s24 = smov 4  }
  0x34   :  { %46 = dma.hbm_to_vmem [thread:$0]  %s2022_s2, 3072, %s41_s6, [#allocation6], %s1643_s0, %s1643_s0, %s1644_s24  }
  0x35   :  { %s1645_s27 = smov [#allocation8]   ;;  %s1586_s5 = scalar_lea.hbm %s2023_s3, 3072 }
  0x36   :  { %s52_s28 = sshll.u32 %s1645_s27, 4  ;;  %p1587_p10 = scmp.ne.s32.totalorder %s2023_s3, %s1586_s5  ;;  %s53_s28 = int_to_ptr.vmem [resolvable:$true] %s52_s28 }
  0x37   :  { %p1590_p11 = scmp.lt.u32.totalorder %s1586_s5, %s2023_s3 }
  0x39   :  { %p1592_p12 = pnand %p1590_p11, %p1587_p10 }
  0x3b   :  { %1595 = shalt.err (!%p1592_p12)
}
  0x3c   :  { %s1596_s11 = scalar_lea.vmem %s53_s28, 3072  ;;  %p1601_p0 = scmp.lt.s32.totalorder %s53_s28, %s53_s28 }
  0x3d   :  { %p1597_p13 = scmp.ne.s32.totalorder %s53_s28, %s1596_s11  ;;  %p1602_p1 = scmp.lt.s32.totalorder %s1596_s11, %s1596_s11 }
  0x3f   :  { %p1603_p2 = por %p1602_p1, %p1601_p0 }
  0x41   :  { %p1604_p3 = pnand %p1603_p2, %p1597_p13 }
  0x43   :  { %1607 = shalt.err (!%p1604_p3)
}
  0x44   :  { %58 = dma.hbm_to_vmem [thread:$0]  %s2023_s3, 3072, %s53_s28, [#allocation9], %s1643_s0, %s1643_s0, %s1644_s24  }
  0x45   :  { %1630 = dma.done.wait [#allocation3], 128  }
  0x46   :  { %1631 = vsyncadd [#allocation3], 4294967168 }
  0x47   :  { %1632 = dma.done.wait [#allocation6], 3584  }
  0x48   :  { %1633 = vsyncadd [#allocation6], 4294963712 }
  0x49   :  { %1634 = dma.done.wait [#allocation9], 3072  }
  0x4a   :  { %1635 = vsyncadd [#allocation9], 4294964224  ;;  %v1646_v0 = vmov 2   ;;  %v1647_v1 = vmov 1   ;;  %v77_v2 = vld [vmem:[#allocation2] sm:$0xff]  ;;  %v1648_v3 = vmov 0   ;;  %v83_v29 = vlaneseq }
  0x4b   :  { %1442 = vset.pattern.permute.xlu1 %v1646_v0  ;;  %1440 = vset.pattern.permute.xlu0 %v1647_v1  ;;  %v1444_v4 = vld [vmem:[#allocation7 + $0x80] sm:$0xff]   ;;  %v1649_v5 = vmov 0.0   ;;  %v1446_v7 = vld [vmem:[#allocation7 + $0x88] sm:$0xff]   ;;  %v1449_v10 = vld [vmem:[#allocation7 + $0x90] sm:$0xff]   ;;  %vm1650_vm0 = vmmov 0   ;;  %s1657_s3 = smov [#allocation10]  }
  0x4c   :  { %308 = vperm.xlu1 %1442, %v77_v2   ;;  %198 = vperm.xlu0 %1440, %v77_v2   ;;  %v1445_v6 = vld [vmem:[#allocation7 + $0x40] sm:$0xff]   ;;  %v1448_v9 = vld [vmem:[#allocation7 + $0x48] sm:$0xff]   ;;  %v1451_v12 = vld [vmem:[#allocation7 + $0x50] sm:$0xff]   ;;  %v1743_v30 = vshrl.u32 %v83_v29, 7  ;;  %s1191_s12 = sshll.u32 %s1657_s3, 4  ;;  %s1192_s12 = int_to_ptr.vmem [resolvable:$true] %s1191_s12 }
  0x4d   :  { %1322 = vmatprep.subr.bf16.mxu1 %v1649_v5  ;;  %v1447_v8 = vld [vmem:[#allocation7] sm:$0xff]   ;;  %1262 = vmatprep.subr.bf16.mxu0 %v1445_v6  ;;  %v1450_v11 = vld [vmem:[#allocation7 + $0x8] sm:$0xff]   ;;  %v1452_v13 = vld [vmem:[#allocation7 + $0x98] sm:$0xff]   ;;  %s1608_s13 = scalar_lea.vmem %s1192_s12, 128  ;;  %p1613_p5 = scmp.lt.s32.totalorder %s1192_s12, %s1192_s12 }
  0x4e   :  { %1323 = vmatpush3.bf16.msra.mxu1 %v1444_v4  ;;  %1263 = vmatpush3.bf16.msra.mxu0 %v1447_v8  ;;  %v1453_v14 = vld [vmem:[#allocation7 + $0x10] sm:$0xff]   ;;  %v1454_v15 = vld [vmem:[#allocation7 + $0x58] sm:$0xff]   ;;  %v1455_v16 = vld [vmem:[#allocation7 + $0xa0] sm:$0xff]   ;;  %v313_v31 = vsub.s32 0, %v1743_v30  ;;  %v85_v32 = vsub.s32 1, %v1743_v30  ;;  %v90_v34 = vsub.s32 2, %v1743_v30  ;;  %p1609_p4 = scmp.ne.s32.totalorder %s1192_s12, %s1608_s13  ;;  %p1614_p6 = scmp.lt.s32.totalorder %s1608_s13, %s1608_s13 }
  0x4f   :  { %1324 = vmatprep.subr.bf16.mxu1 %v1649_v5  ;;  %1264 = vmatprep.subr.bf16.mxu0 %v1448_v9  ;;  %v1456_v17 = vld [vmem:[#allocation7 + $0x18] sm:$0xff]   ;;  %v1457_v18 = vld [vmem:[#allocation7 + $0x60] sm:$0xff]   ;;  %v1458_v19 = vld [vmem:[#allocation7 + $0xa8] sm:$0xff]  }
  0x50   :  { %1441 = vset.pattern.permute.xlu0 %v1648_v3  ;;  %1443 = vset.pattern.permute.xlu1 %v1648_v3  ;;  %v1459_v20 = vld [vmem:[#allocation7 + $0x20] sm:$0xff]   ;;  %v1460_v21 = vld [vmem:[#allocation7 + $0x68] sm:$0xff]   ;;  %v1461_v22 = vld [vmem:[#allocation7 + $0xb0] sm:$0xff]   ;;  %p1615_p7 = por %p1614_p6, %p1613_p5 }
  0x51   :  { %80 = vperm.xlu0 %1441, %v77_v2   ;;  %1338 = vmatprep.mubr.msk.bf16.mxu1 %vm1650_vm0, %v1649_v5  ;;  %v1462_v23 = vld [vmem:[#allocation7 + $0x28] sm:$0xff]   ;;  %v1463_v24 = vld [vmem:[#allocation7 + $0x70] sm:$0xff]   ;;  %v1464_v25 = vld [vmem:[#allocation7 + $0xb8] sm:$0xff]  }
  0x52   :  { %1325 = vmatpush3.bf16.msra.mxu1 %v1446_v7  ;;  %1265 = vmatpush3.bf16.msra.mxu0 %v1450_v11  ;;  %v1465_v26 = vld [vmem:[#allocation7 + $0x30] sm:$0xff]   ;;  %v1466_v27 = vld [vmem:[#allocation7 + $0x78] sm:$0xff]   ;;  %v1747_v33 = vld [vmem:[#allocation5] sm:$0xff]  ;;  %v1651_v11 = vmov 683565275   ;;  %p1616_p8 = pnand %p1615_p7, %p1609_p4 }
  0x53   :  { %1326 = vmatprep.subr.bf16.mxu1 %v1649_v5  ;;  %1266 = vmatprep.subr.bf16.mxu0 %v1451_v12  ;;  %v1467_v28 = vld [vmem:[#allocation7 + $0x38] sm:$0xff]   ;;  %v314_v35 = vrot.slane %v1747_v33, %v313_v31  ;;  %v86_v36 = vrot.slane %v1747_v33, %v85_v32  ;;  %v91_v37 = vrot.slane %v1747_v33, %v90_v34 }
  0x56   :  { %1327 = vmatpush3.bf16.msra.mxu1 %v1449_v10  ;;  %1267 = vmatpush3.bf16.msra.mxu0 %v1453_v14 }
  0x57   :  { %1328 = vmatprep.subr.bf16.mxu1 %v1649_v5  ;;  %1268 = vmatprep.subr.bf16.mxu0 %v1454_v15  ;;  %v1653_v15 = vmov 2131351028  }
  0x5a   :  { %1329 = vmatpush3.bf16.msra.mxu1 %v1452_v13  ;;  %1269 = vmatpush3.bf16.msra.mxu0 %v1456_v17  ;;  %v1652_v13 = vmov 2475754826   ;;  %v1654_v17 = vmov 2102212464  }
  0x5b   :  { %1330 = vmatprep.subr.bf16.mxu1 %v1649_v5  ;;  %1270 = vmatprep.subr.bf16.mxu0 %v1457_v18 }
  0x5e   :  { %1331 = vmatpush3.bf16.msra.mxu1 %v1455_v16  ;;  %1271 = vmatpush3.bf16.msra.mxu0 %v1459_v20 }
  0x5f   :  { %1332 = vmatprep.subr.bf16.mxu1 %v1649_v5  ;;  %1272 = vmatprep.subr.bf16.mxu0 %v1460_v21 }
  0x62   :  { %1333 = vmatpush3.bf16.msra.mxu1 %v1458_v19  ;;  %1273 = vmatpush3.bf16.msra.mxu0 %v1462_v23  ;;  %v1655_v19 = vmov 920167782  }
  0x63   :  { %1334 = vmatprep.subr.bf16.mxu1 %v1649_v5  ;;  %1274 = vmatprep.subr.bf16.mxu0 %v1463_v24 }
  0x66   :  { %1335 = vmatpush3.bf16.msra.mxu1 %v1461_v22  ;;  %1275 = vmatpush3.bf16.msra.mxu0 %v1465_v26 }
  0x67   :  { %1336 = vmatprep.subr.bf16.mxu1 %v1649_v5  ;;  %1276 = vmatprep.subr.bf16.mxu0 %v1466_v27 }
  0x6a   :  { %1337 = vmatpush3.bf16.msra.mxu1 %v1464_v25  ;;  %1277 = vmatpush3.bf16.msra.mxu0 %v1467_v28  ;;  %v1656_v28 = vmov 1326507024  }
  0x6b   :  { %1362 = vmatprep.subr.bf16.mxu1 %v1649_v5  ;;  %1342 = vmatprep.subr.bf16.mxu0 %v1649_v5 }
  0xcb   :  { %v309_v38 = vpop.permute.xlu1 %308  ;;  %v199_v39 = vpop.permute.xlu0 %198 }
  0xcc   :  { %v315_v40 = vmul.f32 %v314_v35, %v309_v38  ;;  %v201_v41 = vmul.f32 %v199_v39, %v86_v36 }
  0xce   :  { %v1759_v42 = vadd.f32 %v315_v40, %v91_v37  ;;  %v1761_v43 = vadd.f32 %v201_v41, %v91_v37 }
  0xd0   :  { %v317_v44 = vand.u32 2147483647, %v1759_v42  ;;  %v320_v45 = vand.u32 2139095040, %v1759_v42  ;;  %v206_v46 = vand.u32 2139095040, %v1761_v43  ;;  %v81_v47 = vpop.permute.xlu0 %80  ;;  %v203_v51 = vand.u32 2147483647, %v1761_v43 }
  0xd1   :  { %v87_v48 = vmul.f32 %v86_v36, %v81_v47 }
  0xd2   :  { %v321_v49 = vshrl.u32 %v320_v45, 23  ;;  %v207_v50 = vshrl.u32 %v206_v46, 23  ;;  %v324_v52 = vand.u32 8388607, %v317_v44  ;;  %v1775_v60 = vand.u32 8388607, %v203_v51 }
  0xd3   :  { %v1769_v53 = vadd.f32 %v91_v37, %v87_v48 }
  0xd4   :  { %v1210_v54 = vadd.s32 4294967169, %v321_v49  ;;  %v1206_v55 = vadd.s32 4294967169, %v207_v50  ;;  %v325_v61 = vor.u32 8388608, %v324_v52  ;;  %v211_v4 = vor.u32 8388608, %v1775_v60 }
  0xd5   :  { %v93_v56 = vand.u32 2147483647, %v1769_v53  ;;  %v96_v57 = vand.u32 2139095040, %v1769_v53 }
  0xd6   :  { %v327_v58 = vadd.s32 1, %v1210_v54  ;;  %v213_v59 = vadd.s32 1, %v1206_v55  ;;  %v1780_v7 = vshll.u32 %v325_v61, 8 }
  0xd7   :  { %v97_v62 = vshrl.u32 %v96_v57, 23  ;;  %v100_v63 = vand.u32 8388607, %v93_v56 }
  0xd8   :  { %vm328_vm1 = vcmp.gt.s32.totalorder %v327_v58, 0  ;;  %vm214_vm2 = vcmp.gt.s32.totalorder %v213_v59, 0 }
  0xd9   :  { %v329_v0 = vsel %vm328_vm1, %v327_v58, 0  ;;  %v215_v1 = vsel %vm214_vm2, %v213_v59, 0  ;;  %v1202_v2 = vadd.s32 4294967169, %v97_v62  ;;  %v101_v9 = vor.u32 8388608, %v100_v63 }
  0xda   :  { %v331_v3 = vand.u32 31, %v329_v0  ;;  %v330_v6 = vshrl.u32 %v329_v0, 5  ;;  %v1782_v8 = vshrl.u32 %v215_v1, 5  ;;  %v1789_v21 = vand.u32 31, %v215_v1 }
  0xdb   :  { %v103_v22 = vadd.s32 1, %v1202_v2  ;;  %v1797_v57 = vshll.u32 %v101_v9, 8 }
  0xdc   :  { %v332_v10 = vsub.s32 32, %v331_v3  ;;  %v334_v12 = vshll.u32 %v1651_v11, %v331_v3  ;;  %v337_v14 = vshll.u32 %v1652_v13, %v331_v3  ;;  %v340_v16 = vshll.u32 %v1653_v15, %v331_v3 }
  0xdd   :  { %v343_v18 = vshll.u32 %v1654_v17, %v331_v3  ;;  %v346_v20 = vshll.u32 %v1655_v19, %v331_v3  ;;  %vm349_vm3 = vcmp.lt.s32.totalorder %v330_v6, 1  ;;  %vm352_vm4 = vcmp.lt.s32.totalorder %v330_v6, 4 }
  0xde   :  { %v333_v23 = vshrl.u32 %v1651_v11, %v332_v10  ;;  %v335_v24 = vshrl.u32 %v1652_v13, %v332_v10  ;;  %v338_v25 = vshrl.u32 %v1653_v15, %v332_v10  ;;  %v341_v26 = vshrl.u32 %v1654_v17, %v332_v10 }
  0xdf   :  { %v344_v27 = vshrl.u32 %v1655_v19, %v332_v10  ;;  %v347_v29 = vshrl.u32 %v1656_v28, %v332_v10  ;;  %vm351_vm5 = vcmp.lt.s32.totalorder %v330_v6, 3  ;;  %vm350_vm6 = vcmp.lt.s32.totalorder %v330_v6, 2 }
  0xe0   :  { %v336_v35 = vor.u32 %v335_v24, %v334_v12  ;;  %v339_v36 = vor.u32 %v338_v25, %v337_v14  ;;  %v342_v37 = vor.u32 %v341_v26, %v340_v16  ;;  %vm104_vm7 = vcmp.gt.s32.totalorder %v103_v22, 0 }
  0xe1   :  { %v345_v38 = vor.u32 %v344_v27, %v343_v18  ;;  %v348_v39 = vor.u32 %v347_v29, %v346_v20  ;;  %v105_v50 = vsel %vm104_vm7, %v103_v22, 0  ;;  %v1810_v6 = vsub.s32 32, %v1789_v21 }
  0xe2   :  { %v353_v40 = vsel %vm349_vm3, %v333_v23, %v336_v35  ;;  %v354_v41 = vsel %vm352_vm4, %v342_v37, 2102212464  ;;  %v357_v45 = vsel %vm349_vm3, %v336_v35, %v339_v36  ;;  %v361_v46 = vsel %vm349_vm3, %v339_v36, %v342_v37 }
  0xe3   :  { %v355_v47 = vsel %vm351_vm5, %v339_v36, %v354_v41  ;;  %v358_v48 = vsel %vm352_vm4, %v345_v38, 920167782  ;;  %v362_v49 = vsel %vm352_vm4, %v348_v39, 1326507024  ;;  %v106_v61 = vshrl.u32 %v105_v50, 5 }
  0xe4   :  { %v356_v52 = vsel %vm350_vm6, %v353_v40, %v355_v47  ;;  %v359_v54 = vsel %vm351_vm5, %v342_v37, %v358_v48  ;;  %v363_v55 = vsel %vm351_vm5, %v345_v38, %v362_v49  ;;  %v107_v62 = vand.u32 31, %v105_v50 }
  0xe5   :  { %v360_v58 = vsel %vm350_vm6, %v357_v45, %v359_v54  ;;  %v364_v59 = vsel %vm350_vm6, %v361_v46, %v363_v55  ;;  %v372_v3 = vmul.u32 %v1780_v7, %v356_v52  ;;  %vm125_vm8 = vcmp.lt.s32.totalorder %v106_v61, 1 }
  0xe6   :  { %v1800_v63 = vmul.u32.u64.low %v1780_v7, %v364_v59  ;;  %v1801_v0 = vmul.u32.u64.high %v1780_v7, %v364_v59, %v1800_v63  ;;  %v1804_v1 = vmul.u32.u64.low %v1780_v7, %v360_v58  ;;  %v1805_v2 = vmul.u32.u64.high %v1780_v7, %v360_v58, %v1804_v1 }
  0xe7   :  { %v108_v9 = vsub.s32 32, %v107_v62  ;;  %v110_v10 = vshll.u32 %v1651_v11, %v107_v62  ;;  %v113_v12 = vshll.u32 %v1652_v13, %v107_v62  ;;  %v116_v14 = vshll.u32 %v1653_v15, %v107_v62 }
  0xe8   :  { %v119_v16 = vshll.u32 %v1654_v17, %v107_v62  ;;  %v122_v18 = vshll.u32 %v1655_v19, %v107_v62  ;;  %vm374_vm9 = vc.u32 %v1801_v0, %v1804_v1  ;;  %v375_v23 = vadd.s32 1, %v1805_v2 }
  0xe9   :  { %v111_v20 = vshrl.u32 %v1652_v13, %v108_v9  ;;  %v114_v22 = vshrl.u32 %v1653_v15, %v108_v9  ;;  %v117_v7 = vshrl.u32 %v1654_v17, %v108_v9  ;;  %v109_v24 = vshrl.u32 %v1651_v11, %v108_v9 }
  0xea   :  { %v120_v25 = vshrl.u32 %v1655_v19, %v108_v9  ;;  %v123_v35 = vshrl.u32 %v1656_v28, %v108_v9  ;;  %v376_v36 = vsel %vm374_vm9, %v375_v23, %v1805_v2  ;;  %vm127_vm10 = vcmp.lt.s32.totalorder %v106_v61, 3 }
  0xeb   :  { %v112_v26 = vor.u32 %v111_v20, %v110_v10  ;;  %v115_v27 = vor.u32 %v114_v22, %v113_v12  ;;  %v118_v29 = vor.u32 %v117_v7, %v116_v14  ;;  %vm128_vm11 = vcmp.lt.s32.totalorder %v106_v61, 4 }
  0xec   :  { %v121_v37 = vor.u32 %v120_v25, %v119_v16  ;;  %v377_v38 = vadd.s32 %v376_v36, %v372_v3  ;;  %v124_v39 = vor.u32 %v123_v35, %v122_v18  ;;  %vm126_vm12 = vcmp.lt.s32.totalorder %v106_v61, 2 }
  0xed   :  { %v129_v40 = vsel %vm125_vm8, %v109_v24, %v112_v26  ;;  %v130_v41 = vsel %vm128_vm11, %v118_v29, 2102212464  ;;  %v133_v46 = vsel %vm125_vm8, %v112_v26, %v115_v27  ;;  %v137_v48 = vsel %vm125_vm8, %v115_v27, %v118_v29 }
  0xee   :  { %v131_v45 = vsel %vm127_vm10, %v115_v27, %v130_v41  ;;  %v134_v47 = vsel %vm128_vm11, %v121_v37, 920167782  ;;  %v378_v49 = vadd.s32 536870912, %v377_v38  ;;  %v138_v52 = vsel %vm128_vm11, %v124_v39, 1326507024 }
  0xef   :  { %v135_v50 = vsel %vm127_vm10, %v118_v29, %v134_v47  ;;  %v132_v54 = vsel %vm126_vm12, %v129_v40, %v131_v45  ;;  %v139_v58 = vsel %vm127_vm10, %v121_v37, %v138_v52  ;;  %v220_v59 = vshll.u32 %v1651_v11, %v1789_v21 }
  0xf0   :  { %v136_v55 = vsel %vm126_vm12, %v133_v46, %v135_v50  ;;  %v1835_v62 = vshrl.u32 %v378_v49, 30  ;;  %v140_v63 = vsel %vm126_vm12, %v137_v48, %v139_v58  ;;  %v221_v12 = vshrl.u32 %v1652_v13, %v1810_v6 }
  0xf1   :  { %v1838_v2 = vmul.u32.u64.low %v1797_v57, %v136_v55  ;;  %v1839_v3 = vmul.u32.u64.high %v1797_v57, %v136_v55, %v1838_v2  ;;  %v1843_v9 = vmul.u32.u64.low %v1797_v57, %v140_v63  ;;  %v1844_v10 = vmul.u32.u64.high %v1797_v57, %v140_v63, %v1843_v9 }
  0xf2   :  { %v223_v61 = vshll.u32 %v1652_v13, %v1789_v21  ;;  %v380_v14 = vshll.u32 %v1835_v62, 30  ;;  %v224_v16 = vshrl.u32 %v1653_v15, %v1810_v6  ;;  %v226_v18 = vshll.u32 %v1653_v15, %v1789_v21 }
  0xf3   :  { %v227_v20 = vshrl.u32 %v1654_v17, %v1810_v6  ;;  %v148_v22 = vmul.u32 %v1797_v57, %v132_v54  ;;  %v222_v7 = vor.u32 %v221_v12, %v220_v59  ;;  %v229_v23 = vshll.u32 %v1654_v17, %v1789_v21 }
  0xf4   :  { %v230_v13 = vshrl.u32 %v1655_v19, %v1810_v6  ;;  %v381_v24 = vsub.s32 %v377_v38, %v380_v14  ;;  %v151_v25 = vadd.s32 1, %v1839_v3  ;;  %v225_v26 = vor.u32 %v224_v16, %v223_v61 }
  0xf5   :  { %v228_v27 = vor.u32 %v227_v20, %v226_v18  ;;  %vm150_vm13 = vc.u32 %v1844_v10, %v1838_v2  ;;  %v232_v29 = vshll.u32 %v1655_v19, %v1789_v21  ;;  %v233_v57 = vshrl.u32 %v1656_v28, %v1810_v6 }
  0xf6   :  { %v231_v15 = vor.u32 %v230_v13, %v229_v23  ;;  %v383_v35 = vsub.s32 0, %v381_v24  ;;  %v152_v17 = vsel %vm150_vm13, %v151_v25, %v1839_v3  ;;  %v219_v36 = vshrl.u32 %v1651_v11, %v1810_v6 }
  0xf7   :  { %v251_v37 = vshll.u32 %v211_v4, 8  ;;  %v153_v38 = vadd.s32 %v152_v17, %v148_v22  ;;  %v234_v39 = vor.u32 %v233_v57, %v232_v29  ;;  %vm235_vm14 = vcmp.lt.s32.totalorder %v1782_v8, 1 }
  0xf8   :  { %vm238_vm15 = vcmp.lt.s32.totalorder %v1782_v8, 4  ;;  %v1211_v40 = vmin.u32 %v383_v35, %v381_v24  ;;  %vm236_vm1 = vcmp.lt.s32.totalorder %v1782_v8, 2  ;;  %v243_v21 = vsel %vm235_vm14, %v222_v7, %v225_v26 }
  0xf9   :  { %v240_v19 = vsel %vm238_vm15, %v228_v27, 2102212464  ;;  %v154_v28 = vadd.s32 536870912, %v153_v38  ;;  %vm237_vm2 = vcmp.lt.s32.totalorder %v1782_v8, 3  ;;  %v244_v41 = vsel %vm238_vm15, %v231_v15, 920167782 }
  0xfa   :  { %v247_v45 = vsel %vm235_vm14, %v225_v26, %v228_v27  ;;  %v385_v11 = vclz %v1211_v40  ;;  %v239_v6 = vsel %vm235_vm14, %v219_v36, %v222_v7  ;;  %v245_v60 = vsel %vm237_vm2, %v228_v27, %v244_v41 }
  0xfb   :  { %v248_v4 = vsel %vm238_vm15, %v234_v39, 1326507024  ;;  %v1878_v46 = vshrl.u32 %v154_v28, 30  ;;  %v241_v47 = vsel %vm237_vm2, %v225_v26, %v240_v19  ;;  %v246_v48 = vsel %vm236_vm1, %v243_v21, %v245_v60 }
  0xfc   :  { %v249_v49 = vsel %vm237_vm2, %v231_v15, %v248_v4  ;;  %v1212_v50 = vadd.s32 4294967294, %v385_v11  ;;  %v1884_v54 = vmul.u32.u64.low %v251_v37, %v246_v48  ;;  %v1885_v55 = vmul.u32.u64.high %v251_v37, %v246_v48, %v1884_v54 }
  0xfd   :  { %v250_v52 = vsel %vm236_vm1, %v247_v45, %v249_v49  ;;  %v156_v58 = vshll.u32 %v1878_v46, 30  ;;  %v242_v3 = vsel %vm236_vm1, %v239_v6, %v241_v47  ;;  %v373_v61 = vadd.s32 %v1804_v1, %v1801_v0 }
  0xfe   :  { %v1889_v59 = vmul.u32.u64.low %v251_v37, %v250_v52  ;;  %v1890_v63 = vmul.u32.u64.high %v251_v37, %v250_v52, %v1889_v59  ;;  %vm1213_vm3 = vcmp.lt.s32.totalorder %v1212_v50, 0  ;;  %v261_v18 = vadd.s32 1, %v1885_v55 }
  0xff   :  { %v388_v9 = vsel %vm1213_vm3, 0, %v1212_v50  ;;  %v157_v12 = vsub.s32 %v153_v38, %v156_v58  ;;  %v258_v22 = vmul.u32 %v251_v37, %v242_v3  ;;  %v403_v39 = vsub.s32 4, %v1835_v62 }
 0x100   :  { %v389_v14 = vsub.s32 32, %v388_v9  ;;  %v393_v16 = vsub.s32 4294967266, %v388_v9  ;;  %vm260_vm4 = vc.u32 %v1890_v63, %v1884_v54  ;;  %v390_v7 = vshll.u32 %v381_v24, %v388_v9 }
 0x101   :  { %v159_v20 = vsub.s32 0, %v157_v12  ;;  %v262_v8 = vsel %vm260_vm4, %v261_v18, %v1885_v55  ;;  %v149_v40 = vadd.s32 %v1838_v2, %v1844_v10  ;;  %vm319_vm6 = vcmp.lt.s32.totalorder %v1759_v42, 0 }
 0x102   :  { %v391_v23 = vshrl.u32 %v373_v61, %v389_v14  ;;  %v394_v13 = vadd.s32 127, %v393_v16  ;;  %v263_v26 = vadd.s32 %v262_v8, %v258_v22  ;;  %vm318_vm7 = vcmp.le.f32.partialorder %v317_v44, 0.7853982 }
 0x103   :  { %v1203_v25 = vmin.u32 %v159_v20, %v157_v12  ;;  %v404_v47 = vsel %vm319_vm6, %v403_v39, %v1835_v62  ;;  %v259_v62 = vadd.s32 %v1884_v54, %v1890_v63  ;;  %vm95_vm9 = vcmp.lt.s32.totalorder %v1769_v53, 0 }
 0x104   :  { %v392_v27 = vor.u32 %v391_v23, %v390_v7  ;;  %v395_v15 = vshll.u32 %v394_v13, 23  ;;  %v264_v0 = vadd.s32 536870912, %v263_v26  ;;  %v406_v55 = vsel %vm318_vm7, 0, %v404_v47 }
 0x105   :  { %v161_v29 = vclz %v1203_v25  ;;  %v410_v9 = vadd.s32 3, %v406_v55  ;;  %vm1916_vm10 = vcmp.le.f32.partialorder %v93_v56, 0.7853982  ;;  %v179_v56 = vsub.s32 4, %v1878_v46 }
 0x106   :  { %v396_v1 = vor.u32 4788187, %v395_v15  ;;  %v1900_v35 = vshrl.u32 %v264_v0, 30  ;;  %v399_v36 = vcvt.s32.f32 %v392_v27  ;;  %vm409_vm13 = vweird.f32 %v1759_v42 }
 0x107   :  { %v1204_v57 = vadd.s32 4294967294, %v161_v29  ;;  %v411_v18 = vand.u32 3, %v410_v9  ;;  %vm205_vm15 = vcmp.lt.s32.totalorder %v1761_v43, 0  ;;  %vm204_vm1 = vcmp.le.f32.partialorder %v203_v51, 0.7853982 }
 0x108   :  { %v397_v17 = vand.u32 2147483647, %v396_v1  ;;  %v266_v37 = vshll.u32 %v1900_v35, 30  ;;  %v289_v39 = vsub.s32 4, %v1900_v35 }
 0x109   :  { %vm1205_vm5 = vcmp.lt.s32.totalorder %v1204_v57, 0  ;;  %vm416_vm11 = vcmp.eq.s32.totalorder %v411_v18, 2  ;;  %vm413_vm12 = vcmp.eq.s32.totalorder %v411_v18, 0  ;;  %vm412_vm14 = vcmp.lt.s32.totalorder %v411_v18, 2 }
 0x10a   :  { %v400_v24 = vmul.f32 %v399_v36, %v397_v17  ;;  %v164_v38 = vsel %vm1205_vm5, 0, %v1204_v57  ;;  %v267_v28 = vsub.s32 %v263_v26, %v266_v37  ;;  %v180_v37 = vsel %vm95_vm9, %v179_v56, %v1878_v46 }
 0x10b   :  { %v165_v19 = vsub.s32 32, %v164_v38  ;;  %v169_v21 = vsub.s32 4294967266, %v164_v38  ;;  %v166_v45 = vshll.u32 %v157_v12, %v164_v38  ;;  %v290_v46 = vsel %vm205_vm15, %v289_v39, %v1900_v35  ;;  %v1474_v39 = vld [vmem:[#allocation8 + $0x30] sm:$0xff]  }
 0x10c   :  { %v401_v41 = vxor.u32 2147483648, %v400_v24  ;;  %v269_v60 = vsub.s32 0, %v267_v28  ;;  %v474_v18 = vsub.s32 3, %v1743_v30 }
 0x10d   :  { %v167_v11 = vshrl.u32 %v149_v40, %v165_v19  ;;  %v170_v6 = vadd.s32 127, %v169_v21  ;;  %v182_v19 = vsel %vm1916_vm10, 0, %v180_v37  ;;  %v1471_v37 = vld [vmem:[#allocation8 + $0x18] sm:$0xff]  }
 0x10e   :  { %v402_v4 = vsel %vm319_vm6, %v401_v41, %v400_v24  ;;  %v1207_v50 = vmin.u32 %v269_v60, %v267_v28  ;;  %vm185_vm6 = vweird.f32 %v1769_v53 }
 0x10f   :  { %v168_v48 = vor.u32 %v167_v11, %v166_v45  ;;  %v171_v49 = vshll.u32 %v170_v6, 23  ;;  %v405_v2 = vsel %vm318_vm7, %v1759_v42, %v402_v4  ;;  %v292_v6 = vsel %vm204_vm1, 0, %v290_v46 }
 0x110   :  { %1492 = vcosq.f32 %v405_v2  ;;  %v271_v52 = vclz %v1207_v50  ;;  %v719_v46 = vsub.s32 4, %v1743_v30 }
 0x111   :  { %v172_v10 = vor.u32 4788187, %v171_v49  ;;  %1494 = vsinq.f32 %v405_v2  ;;  %v175_v59 = vcvt.s32.f32 %v168_v48  ;;  %v296_v48 = vadd.s32 3, %v292_v6 }
 0x112   :  { %v1208_v3 = vadd.s32 4294967294, %v271_v52 }
 0x113   :  { %v173_v58 = vand.u32 2147483647, %v172_v10  ;;  %v297_v51 = vand.u32 3, %v296_v48  ;;  %v1964_v48 = vld [vmem:[#allocation5 + $0x8] sm:$0xff] }
 0x114   :  { %vm1209_vm8 = vcmp.lt.s32.totalorder %v1208_v3, 0 }
 0x115   :  { %v176_v12 = vmul.f32 %v175_v59, %v173_v58  ;;  %v274_v61 = vsel %vm1209_vm8, 0, %v1208_v3  ;;  %vm302_vm5 = vcmp.eq.s32.totalorder %v297_v51, 2  ;;  %vm299_vm7 = vcmp.eq.s32.totalorder %v297_v51, 0 }
 0x116   :  { %v275_v14 = vsub.s32 32, %v274_v61  ;;  %v279_v16 = vsub.s32 4294967266, %v274_v61  ;;  %v276_v7 = vshll.u32 %v267_v28, %v274_v61  ;;  %v186_v28 = vadd.s32 3, %v182_v19 }
 0x117   :  { %v177_v44 = vxor.u32 2147483648, %v176_v12  ;;  %vm298_vm8 = vcmp.lt.s32.totalorder %v297_v51, 2 }
 0x118   :  { %v277_v23 = vshrl.u32 %v259_v62, %v275_v14  ;;  %v280_v13 = vadd.s32 127, %v279_v16  ;;  %v187_v60 = vand.u32 3, %v186_v28  ;;  %v724_v28 = vsub.s32 7, %v1743_v30 }
 0x119   :  { %v178_v22 = vsel %vm95_vm9, %v177_v44, %v176_v12  ;;  %vm295_vm9 = vweird.f32 %v1761_v43 }
 0x11a   :  { %v1493_v8 = vpop.eup %1492  ;;  %v181_v54 = vsel %vm1916_vm10, %v1769_v53, %v178_v22  ;;  %v278_v25 = vor.u32 %v277_v23, %v276_v7  ;;  %v281_v26 = vshll.u32 %v280_v13, 23  ;;  %vm189_vm2 = vcmp.eq.s32.totalorder %v187_v60, 0 }
 0x11b   :  { %v1495_v63 = vpop.eup %1494  ;;  %v417_v27 = vxor.u32 2147483648, %v1493_v8  ;;  %1496 = vcosq.f32 %v181_v54  ;;  %vm192_vm3 = vcmp.eq.s32.totalorder %v187_v60, 2  ;;  %vm188_vm4 = vcmp.lt.s32.totalorder %v187_v60, 2 }
 0x11c   :  { %v414_v15 = vxor.u32 2147483648, %v1495_v63  ;;  %v282_v29 = vor.u32 4788187, %v281_v26  ;;  %1498 = vsinq.f32 %v181_v54  ;;  %v285_v17 = vcvt.s32.f32 %v278_v25 }
 0x11d   :  { %v418_v0 = vsel %vm416_vm11, %v417_v27, %v1495_v63  ;;  %v725_v6 = vrot.slane %v1747_v33, %v724_v28 }
 0x11e   :  { %v415_v1 = vsel %vm413_vm12, %v1493_v8, %v414_v15  ;;  %v283_v57 = vand.u32 2147483647, %v282_v29  ;;  %v1468_v15 = vld [vmem:[#allocation8] sm:$0xff]   ;;  %v1469_v29 = vld [vmem:[#allocation8 + $0x8] sm:$0xff]  }
 0x11f   :  { %v419_v36 = vsel %vm412_vm14, %v415_v1, %v418_v0 }
 0x120   :  { %v420_v24 = vsel %vm409_vm13, nan, %v419_v36  ;;  %v286_v38 = vmul.f32 %v285_v17, %v283_v57  ;;  %v1470_v36 = vld [vmem:[#allocation8 + $0x10] sm:$0xff]  }
 0x121   :  { %v423_v40 = vpack.c.bf16 %v420_v24, %v420_v24  ;;  %v1472_v24 = vld [vmem:[#allocation8 + $0x20] sm:$0xff]  }
 0x122   :  { %v287_v21 = vxor.u32 2147483648, %v286_v38 }
 0x123   :  { %1339 = vmatmul.mubr.bf16.vlgmr.msra.gmra.mrb[0].mxu1 %v423_v40  ;;  %v1475_v40 = vld [vmem:[#allocation8 + $0x38] sm:$0xff]  }
 0x124   :  { %1378 = vmatprep.mubr.msk.bf16.mxu1 %vm1650_vm0, %v1649_v5  ;;  %v288_v42 = vsel %vm205_vm15, %v287_v21, %v286_v38  ;;  %v1473_v38 = vld [vmem:[#allocation8 + $0x28] sm:$0xff]  }
 0x125   :  { %v1497_v41 = vpop.eup %1496  ;;  %v291_v45 = vsel %vm204_vm1, %v1761_v43, %v288_v42  ;;  %v475_v43 = vrot.slane %v1747_v33, %v474_v18 }
 0x126   :  { %v1499_v11 = vpop.eup %1498  ;;  %1500 = vcosq.f32 %v291_v45  ;;  %v193_v47 = vxor.u32 2147483648, %v1497_v41 }
 0x127   :  { %1502 = vsinq.f32 %v291_v45  ;;  %v190_v4 = vxor.u32 2147483648, %v1499_v11 }
 0x128   :  { %v194_v50 = vsel %vm192_vm3, %v193_v47, %v1499_v11 }
 0x129   :  { %v191_v49 = vsel %vm189_vm2, %v1497_v41, %v190_v4  ;;  %v720_v41 = vrot.slane %v1747_v33, %v719_v46 }
 0x12a   :  { %v195_v35 = vsel %vm188_vm4, %v191_v49, %v194_v50  ;;  %v747_v49 = vrot.slane %v1964_v48, %v90_v34 }
 0x12b   :  { %v196_v59 = vsel %vm185_vm6, nan, %v195_v35 }
 0x12c   :  { %v421_v61 = vpack.c.bf16 %v196_v59, %v196_v59 }
 0x130   :  { %v1501_v2 = vpop.eup %1500 }
 0x131   :  { %v1503_v10 = vpop.eup %1502  ;;  %v303_v52 = vxor.u32 2147483648, %v1501_v2 }
 0x132   :  { %v300_v55 = vxor.u32 2147483648, %v1503_v10 }
 0x133   :  { %v304_v58 = vsel %vm302_vm5, %v303_v52, %v1503_v10 }
 0x134   :  { %v301_v3 = vsel %vm299_vm7, %v1501_v2, %v300_v55 }
 0x135   :  { %v305_v9 = vsel %vm298_vm8, %v301_v3, %v304_v58 }
 0x136   :  { %v306_v12 = vsel %vm295_vm9, nan, %v305_v9 }
 0x137   :  { %v422_v44 = vpack.c.bf16 %v306_v12, %v306_v12  ;;  %v1476_v12 = vld [vmem:[#allocation8 + $0x40] sm:$0xff]  }
 0x138   :  { %1363 = vmatpush3.bf16.msra.mxu1 %v1476_v12 }
 0x139   :  { %652 = vmatprep.mubr.bf16.mxu0 %v422_v44  ;;  %1364 = vmatprep.subr.bf16.mxu1 %v1649_v5 }
 0x13a   :  { %653 = vmatmul.mubr.bf16.vlgmr.msra.gmra.mrb[0].mxu0 %v421_v61  ;;  %v1477_v61 = vld [vmem:[#allocation8 + $0x48] sm:$0xff]  }
 0x13b   :  { %1358 = vmatprep.mubr.msk.bf16.mxu0 %vm1650_vm0, %v1649_v5  ;;  %1343 = vmatpush3.bf16.msra.mxu0 %v1468_v15 }
 0x13c   :  { %1344 = vmatprep.subr.bf16.mxu0 %v1649_v5  ;;  %1365 = vmatpush3.bf16.msra.mxu1 %v1477_v61 }
 0x13d   :  { %1366 = vmatprep.subr.bf16.mxu1 %v1649_v5 }
 0x13f   :  { %1345 = vmatpush3.bf16.msra.mxu0 %v1469_v29 }
 0x140   :  { %1346 = vmatprep.subr.bf16.mxu0 %v1649_v5 }
 0x143   :  { %1347 = vmatpush3.bf16.msra.mxu0 %v1470_v36 }
 0x144   :  { %1348 = vmatprep.subr.bf16.mxu0 %v1649_v5 }
 0x147   :  { %1349 = vmatpush3.bf16.msra.mxu0 %v1471_v37 }
 0x148   :  { %1350 = vmatprep.subr.bf16.mxu0 %v1649_v5 }
 0x14b   :  { %1351 = vmatpush3.bf16.msra.mxu0 %v1472_v24 }
 0x14c   :  { %1352 = vmatprep.subr.bf16.mxu0 %v1649_v5 }
 0x14f   :  { %1353 = vmatpush3.bf16.msra.mxu0 %v1473_v38 }
 0x150   :  { %1354 = vmatprep.subr.bf16.mxu0 %v1649_v5 }
 0x153   :  { %1355 = vmatpush3.bf16.msra.mxu0 %v1474_v39 }
 0x154   :  { %1356 = vmatprep.subr.bf16.mxu0 %v1649_v5 }
 0x157   :  { %1357 = vmatpush3.bf16.msra.mxu0 %v1475_v40 }
 0x158   :  { %1382 = vmatprep.subr.bf16.mxu0 %v1649_v5 }
 0x1f6   :  { %v694_v62 = vpop.f32.mrb[0].mxu1 }
 0x1f7   :  { %v1340_v14 = vpop.f32.mrb[1].mxu1 }
 0x1f8   :  { %v697_v16 = vpop.f32.mrb[2].mxu1 }
 0x1f9   :  { %v1341_v53 = vpop.f32.mrb[3].mxu1  ;;  %v1478_v16 = vld [vmem:[#allocation8 + $0x50] sm:$0xff]  }
 0x1fa   :  { %1367 = vmatpush3.bf16.msra.mxu1 %v1478_v16  ;;  %v1479_v53 = vld [vmem:[#allocation8 + $0x58] sm:$0xff]  }
 0x1fb   :  { %1368 = vmatprep.subr.bf16.mxu1 %v1649_v5 }
 0x1fe   :  { %1369 = vmatpush3.bf16.msra.mxu1 %v1479_v53 }
 0x1ff   :  { %1370 = vmatprep.subr.bf16.mxu1 %v1649_v5 }
 0x20d   :  { %v1278_v20 = vpop.f32.mrb[0].mxu0 }
 0x20e   :  { %v1279_v22 = vpop.f32.mrb[1].mxu0 }
 0x20f   :  { %v1280_v7 = vadd.f32 %v1279_v22, %v1278_v20  ;;  %v1281_v23 = vpop.f32.mrb[2].mxu0  ;;  %v1480_v20 = vld [vmem:[#allocation8 + $0x60] sm:$0xff]   ;;  %v1482_v22 = vld [vmem:[#allocation8 + $0x70] sm:$0xff]  }
 0x210   :  { %v1282_v13 = vpop.f32.mrb[3].mxu0  ;;  %1371 = vmatpush3.bf16.msra.mxu1 %v1480_v20 }
 0x211   :  { %v655_v8 = vadd.f32 %v1280_v7, %v475_v43  ;;  %v1481_v43 = vld [vmem:[#allocation8 + $0x68] sm:$0xff]   ;;  %1372 = vmatprep.subr.bf16.mxu1 %v1649_v5  ;;  %v1483_v7 = vld [vmem:[#allocation8 + $0x78] sm:$0xff]  }
 0x213   :  { %v695_v54 = vadd.f32 %v694_v62, %v655_v8 }
 0x214   :  { %1373 = vmatpush3.bf16.msra.mxu1 %v1481_v43 }
 0x215   :  { %v701_v63 = vmul.f32 0.70710677, %v695_v54  ;;  %v700_v26 = vmul.f32 0.5, %v695_v54  ;;  %1374 = vmatprep.subr.bf16.mxu1 %v1649_v5  ;;  %v855_v54 = vsub.s32 5, %v1743_v30 }
 0x217   :  { %1504 = verf.f32 %v701_v63  ;;  %v856_v63 = vrot.slane %v1747_v33, %v855_v54 }
 0x218   :  { %1375 = vmatpush3.bf16.msra.mxu1 %v1482_v22 }
 0x219   :  { %1376 = vmatprep.subr.bf16.mxu1 %v1649_v5 }
 0x21c   :  { %1377 = vmatpush3.bf16.msra.mxu1 %v1483_v7 }
 0x21d   :  { %1402 = vmatprep.subr.bf16.mxu1 %v1649_v5 }
 0x221   :  { %v1505_v25 = vpop.eup %1504 }
 0x222   :  { %v703_v27 = vadd.f32 1.0, %v1505_v25 }
 0x224   :  { %v704_v56 = vmul.f32 %v703_v27, %v700_v26  ;;  %v861_v26 = vrot.slane %v1964_v48, %v313_v31 }
 0x226   :  { %705 = vadd.xlane.f32.xlu1 %v704_v56 }
 0x2b3   :  { %v706_v0 = vpop.xlane.xlu1 %705 }
 0x2b4   :  { %v708_v1 = vmul.f32 0.0078125, %v706_v0  ;;  %v884_v0 = vrot.slane %v1964_v48, %v474_v18 }
 0x2b6   :  { %v709_v57 = vsub.f32 %v704_v56, %v708_v1 }
 0x2b8   :  { %v710_v17 = vmul.f32 %v709_v57, %v709_v57 }
 0x2ba   :  { %711 = vadd.xlane.f32.xlu0 %v710_v17 }
 0x347   :  { %v712_v19 = vpop.xlane.xlu0 %711 }
 0x348   :  { %v713_v21 = vmul.f32 0.0078125, %v712_v19 }
 0x34a   :  { %v714_v42 = vadd.f32 1e-05, %v713_v21  ;;  %v1484_v21 = vld [vmem:[#allocation8 + $0x80] sm:$0xff]  }
 0x34c   :  { %1506 = vrsqrt.f32 %v714_v42  ;;  %v1485_v42 = vld [vmem:[#allocation8 + $0x88] sm:$0xff]  }
 0x356   :  { %v1507_v45 = vpop.eup %1506 }
 0x357   :  { %v716_v11 = vmul.f32 %v1507_v45, %v709_v57 }
 0x359   :  { %v721_v60 = vmul.f32 %v720_v41, %v716_v11  ;;  %v1486_v11 = vld [vmem:[#allocation8 + $0x90] sm:$0xff]  }
 0x35b   :  { %v726_v4 = vadd.f32 %v725_v6, %v721_v60  ;;  %v1487_v6 = vld [vmem:[#allocation8 + $0x98] sm:$0xff]   ;;  %v1488_v60 = vld [vmem:[#allocation8 + $0xa0] sm:$0xff]  }
 0x35d   :  { %v727_v47 = vpack.c.bf16 %v726_v4, %v726_v4  ;;  %v1489_v4 = vld [vmem:[#allocation8 + $0xa8] sm:$0xff]  }
 0x35f   :  { %1359 = vmatmul.mubr.bf16.vlgmr.msra.gmra.mrb[4].mxu0 %v727_v47  ;;  %v1490_v47 = vld [vmem:[#allocation8 + $0xb0] sm:$0xff]  }
 0x360   :  { %1398 = vmatprep.mubr.msk.bf16.mxu0 %vm1650_vm0, %v1649_v5  ;;  %1383 = vmatpush3.bf16.msra.mxu0 %v1484_v21 }
 0x361   :  { %1384 = vmatprep.subr.bf16.mxu0 %v1649_v5 }
 0x364   :  { %1385 = vmatpush3.bf16.msra.mxu0 %v1485_v42 }
 0x365   :  { %1386 = vmatprep.subr.bf16.mxu0 %v1649_v5 }
 0x368   :  { %1387 = vmatpush3.bf16.msra.mxu0 %v1486_v11 }
 0x369   :  { %1388 = vmatprep.subr.bf16.mxu0 %v1649_v5 }
 0x36c   :  { %1389 = vmatpush3.bf16.msra.mxu0 %v1487_v6 }
 0x36d   :  { %1390 = vmatprep.subr.bf16.mxu0 %v1649_v5 }
 0x370   :  { %1391 = vmatpush3.bf16.msra.mxu0 %v1488_v60 }
 0x371   :  { %1392 = vmatprep.subr.bf16.mxu0 %v1649_v5 }
 0x374   :  { %1393 = vmatpush3.bf16.msra.mxu0 %v1489_v4 }
 0x375   :  { %1394 = vmatprep.subr.bf16.mxu0 %v1649_v5 }
 0x378   :  { %1395 = vmatpush3.bf16.msra.mxu0 %v1490_v47 }
 0x379   :  { %1396 = vmatprep.subr.bf16.mxu0 %v1649_v5 }
 0x432   :  { %v830_v50 = vpop.f32.mrb[4].mxu0 }
 0x433   :  { %v831_v51 = vadd.f32 %v830_v50, %v747_v49  ;;  %v1360_v2 = vpop.f32.mrb[5].mxu0  ;;  %v1491_v49 = vld [vmem:[#allocation8 + $0xb8] sm:$0xff]  }
 0x434   :  { %v833_v35 = vpop.f32.mrb[6].mxu0  ;;  %1397 = vmatpush3.bf16.msra.mxu0 %v1491_v49 }
 0x435   :  { %v837_v10 = vmul.f32 0.70710677, %v831_v51  ;;  %v1361_v52 = vpop.f32.mrb[7].mxu0  ;;  %v836_v58 = vmul.f32 0.5, %v831_v51  ;;  %v992_v35 = vsub.s32 6, %v1743_v30 }
 0x437   :  { %1508 = verf.f32 %v837_v10  ;;  %v993_v10 = vrot.slane %v1747_v33, %v992_v35 }
 0x441   :  { %v1509_v55 = vpop.eup %1508 }
 0x442   :  { %v839_v59 = vadd.f32 1.0, %v1509_v55  ;;  %v998_v55 = vrot.slane %v1964_v48, %v85_v32 }
 0x444   :  { %v840_v3 = vmul.f32 %v839_v59, %v836_v58 }
 0x446   :  { %v841_v9 = vadd.f32 %v840_v3, %v704_v56 }
 0x448   :  { %842 = vadd.xlane.f32.xlu1 %v841_v9 }
 0x4d5   :  { %v843_v34 = vpop.xlane.xlu1 %842 }
 0x4d6   :  { %v844_v44 = vmul.f32 0.0078125, %v843_v34 }
 0x4d8   :  { %v845_v62 = vsub.f32 %v841_v9, %v844_v44 }
 0x4da   :  { %v846_v14 = vmul.f32 %v845_v62, %v845_v62 }
 0x4dc   :  { %847 = vadd.xlane.f32.xlu0 %v846_v14 }
 0x569   :  { %v848_v23 = vpop.xlane.xlu0 %847 }
 0x56a   :  { %v849_v13 = vmul.f32 0.0078125, %v848_v23 }
 0x56c   :  { %v850_v8 = vadd.f32 1e-05, %v849_v13  ;;  %v75_v13 = vld [vmem:[#allocation5 + $0x18] sm:$0xff] }
 0x56e   :  { %1510 = vrsqrt.f32 %v850_v8 }
 0x578   :  { %v1511_v25 = vpop.eup %1510 }
 0x579   :  { %v852_v27 = vmul.f32 %v1511_v25, %v845_v62  ;;  %v1130_v25 = vrot.slane %v1964_v48, %v855_v54 }
 0x57b   :  { %v857_v56 = vmul.f32 %v856_v63, %v852_v27 }
 0x57d   :  { %v862_v15 = vadd.f32 %v861_v26, %v857_v56  ;;  %v1135_v56 = vrot.slane %v1964_v48, %v992_v35 }
 0x57f   :  { %v863_v29 = vpack.c.bf16 %v862_v15, %v862_v15 }
 0x581   :  { %1379 = vmatmul.mubr.bf16.vlgmr.msra.gmra.mrb[4].mxu1 %v863_v29 }
 0x582   :  { %1404 = vmatprep.mubr.msk.bf16.mxu1 %vm1650_vm0, %v1649_v5  ;;  %v1021_v5 = vrot.slane %v1964_v48, %v719_v46  ;;  %vm1183_vm0 = vcmask 64512  }
 0x654   :  { %v967_v1 = vpop.f32.mrb[4].mxu1 }
 0x655   :  { %v968_v57 = vadd.f32 %v967_v1, %v884_v0  ;;  %v1380_v17 = vpop.f32.mrb[5].mxu1  ;;  %v74_v1 = vld [vmem:[#allocation5 + $0x10] sm:$0xff] }
 0x656   :  { %v970_v36 = vpop.f32.mrb[6].mxu1 }
 0x657   :  { %v974_v37 = vmul.f32 0.70710677, %v968_v57  ;;  %v1381_v24 = vpop.f32.mrb[7].mxu1  ;;  %v973_v38 = vmul.f32 0.5, %v968_v57  ;;  %v76_v57 = vpack.c.bf16 %v74_v1, %v74_v1 }
 0x659   :  { %1512 = verf.f32 %v974_v37 }
 0x663   :  { %v1513_v31 = vpop.eup %1512 }
 0x664   :  { %v976_v39 = vadd.f32 1.0, %v1513_v31 }
 0x666   :  { %v977_v40 = vmul.f32 %v976_v39, %v973_v38 }
 0x668   :  { %v978_v19 = vadd.f32 %v977_v40, %v841_v9 }
 0x66a   :  { %979 = vadd.xlane.f32.xlu1 %v978_v19 }
 0x6f7   :  { %v980_v18 = vpop.xlane.xlu1 %979 }
 0x6f8   :  { %v981_v28 = vmul.f32 0.0078125, %v980_v18 }
 0x6fa   :  { %v982_v41 = vsub.f32 %v978_v19, %v981_v28 }
 0x6fc   :  { %v983_v45 = vmul.f32 %v982_v41, %v982_v41 }
 0x6fe   :  { %984 = vadd.xlane.f32.xlu0 %v983_v45 }
 0x78b   :  { %v985_v50 = vpop.xlane.xlu0 %984 }
 0x78c   :  { %v986_v51 = vmul.f32 0.0078125, %v985_v50 }
 0x78e   :  { %v987_v2 = vadd.f32 1e-05, %v986_v51 }
 0x790   :  { %1514 = vrsqrt.f32 %v987_v2 }
 0x79a   :  { %v1515_v52 = vpop.eup %1514 }
 0x79b   :  { %v989_v58 = vmul.f32 %v1515_v52, %v982_v41 }
 0x79d   :  { %v994_v59 = vmul.f32 %v993_v10, %v989_v58 }
 0x79f   :  { %v999_v3 = vadd.f32 %v998_v55, %v994_v59 }
 0x7a1   :  { %v1000_v9 = vpack.c.bf16 %v999_v3, %v999_v3 }
 0x7a3   :  { %1399 = vmatmul.mubr.bf16.vlgmr.msra.gmra.mrb[8].mxu0 %v1000_v9 }
 0x876   :  { %v1104_v12 = vpop.f32.mrb[8].mxu0 }
 0x877   :  { %v1105_v61 = vadd.f32 %v1104_v12, %v1021_v5  ;;  %v1400_v34 = vpop.f32.mrb[9].mxu0 }
 0x878   :  { %v1107_v44 = vpop.f32.mrb[10].mxu0 }
 0x879   :  { %v1111_v62 = vmul.f32 0.70710677, %v1105_v61  ;;  %v1401_v33 = vpop.f32.mrb[11].mxu0  ;;  %v1110_v16 = vmul.f32 0.5, %v1105_v61 }
 0x87b   :  { %1516 = verf.f32 %v1111_v62 }
 0x885   :  { %v1517_v14 = vpop.eup %1516 }
 0x886   :  { %v1113_v53 = vadd.f32 1.0, %v1517_v14 }
 0x888   :  { %v1114_v32 = vmul.f32 %v1113_v53, %v1110_v16 }
 0x88a   :  { %v1115_v20 = vadd.f32 %v1114_v32, %v978_v19 }
 0x88c   :  { %1116 = vadd.xlane.f32.xlu1 %v1115_v20 }
 0x89d   :  { %1140 = vperm.xlu1 %1443, %v75_v13  }
 0x919   :  { %v1117_v43 = vpop.xlane.xlu1 %1116 }
 0x91a   :  { %v1118_v22 = vmul.f32 0.0078125, %v1117_v43 }
 0x91c   :  { %v1119_v7 = vsub.f32 %v1115_v20, %v1118_v22 }
 0x91d   :  { %v1141_v17 = vpop.permute.xlu1 %1140 }
 0x91e   :  { %v1120_v23 = vmul.f32 %v1119_v7, %v1119_v7 }
 0x920   :  { %1121 = vadd.xlane.f32.xlu0 %v1120_v23 }
 0x9ad   :  { %v1122_v46 = vpop.xlane.xlu0 %1121 }
 0x9ae   :  { %v1123_v8 = vmul.f32 0.0078125, %v1122_v46 }
 0x9b0   :  { %v1124_v63 = vadd.f32 1e-05, %v1123_v8 }
 0x9b2   :  { %1518 = vrsqrt.f32 %v1124_v63 }
 0x9bc   :  { %v1519_v26 = vpop.eup %1518 }
 0x9bd   :  { %v1126_v27 = vmul.f32 %v1519_v26, %v1119_v7 }
 0x9bf   :  { %v1131_v15 = vmul.f32 %v1130_v25, %v1126_v27 }
 0x9c1   :  { %v1136_v29 = vadd.f32 %v1135_v56, %v1131_v15 }
 0x9c3   :  { %v1137_v0 = vpack.c.bf16 %v1136_v29, %v1136_v29 }
 0x9c5   :  { %1403 = vmatpush3.bf16.xpose.msra.mxu1 %v1137_v0 }
 0x9cc   :  { %1405 = vmatmul.mubr.bf16.vlgmr.msra.gmra.mrb[8].mxu1 %v76_v57 }
 0xa9f   :  { %v1177_v36 = vpop.f32.mrb[8].mxu1 }
 0xaa0   :  { %v1406_v37 = vpop.f32.mrb[9].mxu1  ;;  %v1178_v30 = vadd.f32 %v1177_v36, %v1141_v17 }
 0xaa1   :  { %v1180_v54 = vpop.f32.mrb[10].mxu1 }
 0xaa2   :  { %v1407_v24 = vpop.f32.mrb[11].mxu1  ;;  %1184 = vst.msk [vmem:[#allocation10] sm:$0xff] %vm1183_vm0, %v1178_v30 }
 0xaa3   :  { %1619 = shalt.err (!%p1616_p8)
}
 0xaa4   :  { %s1620_s15 = scalar_lea.hbm %s2024_s4, 128 }
 0xaa5   :  { %p1621_p9 = scmp.ne.s32.totalorder %s2024_s4, %s1620_s15  ;;  %p1624_p10 = scmp.lt.u32.totalorder %s1620_s15, %s2024_s4 }
 0xaa7   :  { %p1626_p11 = pnand %p1624_p10, %p1621_p9 }
 0xaa9   :  { %1629 = shalt.err (!%p1626_p11)
}
 0xaaa   :  { %1194 = dma.vmem_to_hbm [thread:$0]  %s1192_s12, 128, %s2024_s4, [#allocation4]  }
 0xaab   :  { %1636 = dma.done.wait [#allocation4], 128  }
 0xaac   :  { %1637 = vsyncadd [#allocation4], 4294967168 }
 0xaad   :  { %1198 = vsyncpa [#allocation3], 1 }
 0xaae   :  { %1199 = vsyncpa [#allocation6], 1 }
 0xaaf   :  { %1200 = vsyncpa [#allocation9], 1 }
 0xab0   :  { %1201 = vsyncpa [#allocation4], 1 }

</bundles_post_ra>
